<compile_context>
chip_gen: v5e
topology: v5e:2x2
jax: 0.10.0
libtpu: 0.0.40
codegen_flags: <defaults>
</compile_context>

<pallas_src>
import jax
import jax.numpy as jnp
from jax import lax
from jax.experimental import pallas as pl
from jax.experimental.pallas import tpu as pltpu

# ---------------------------------------------------------------------------
# Model hyper-parameters (scaled-down, lane-dense ECAPA stand-in)
# ---------------------------------------------------------------------------
FRAME_LEN = 80           # real samples per frame (learned "fbank" frontend)
FRAME_PAD = 128          # host-padded frame length (lane-dense input, K-aligned matmul)
CH        = 128          # channel width everywhere (lane-dense; stands in for eca_c=1024)
ATT       = 128          # ASP bottleneck dim (lane-dense)
NUM_OUT   = 192          # embedding dim (module default num_out=192)
OUT_PAD   = 256          # lane-dense padded FC output, sliced back to NUM_OUT in the wrapper
MXU_DTYPE = jnp.bfloat16
EPS       = 1e-4
DEFAULT_BB = 16          # batch block: M = BB*T = 256 = full MXU tile on v6e/v7x (use 8 on v5e)


# ---------------------------------------------------------------------------
# In-kernel helpers
# ---------------------------------------------------------------------------
def _dot(a, b):
    """MXU matmul: activations cast to bf16, weights already bf16, f32 accumulation."""
    return jnp.dot(a.astype(MXU_DTYPE), b, preferred_element_type=jnp.float32)


def _conv1d_same(h, w_col, bias, *, k, d, T, t_idx):
    """Dilated 'same' 1D conv over time for BB packed sequences.

    h:     (M, Cin) f32, M = BB*T rows, sequence-major.
    w_col: (k*Cin, Cout) bf16, tap-major im2col layout.
    Each tap is a global sublane roll (XLU) plus a per-sequence validity mask (VPU), so the
    implicit zero padding never mixes rows across sequences and activations stay f32 until the
    single wide MXU matmul.
    """
    M = h.shape[0]
    pad = (k - 1) * d // 2
    taps = []
    for j in range(k):                                   # static unroll
        off = j * d - pad                                # output row t reads input row t + off
        if off == 0:
            shifted = h
        else:
            shifted = pltpu.roll(h, shift=(-off) % M, axis=0)   # out[g] = in[(g+off) mod M]
        valid = jnp.logical_and(t_idx + off >= 0, t_idx + off < T)
        taps.append(jnp.where(valid, shifted, 0.0))      # zero rows <=> zero padding
    xcol = jnp.concatenate(taps, axis=1)                 # (M, k*Cin), lane-aligned concat
    y = _dot(xcol, w_col) + bias                         # one wide MXU matmul
    return jnp.maximum(y, 0.0)                           # ReLU in f32 (v5e-safe)


# ---------------------------------------------------------------------------
# Fused forward kernel (BB sequences per grid step)
# ---------------------------------------------------------------------------
def _fused_kernel(frames_ref, fb_w_ref, fb_b_ref,
                  c1_w_ref, c1_b_ref, c2_w_ref, c2_b_ref, c3_w_ref, c3_b_ref,
                  a1_w_ref, a1_b_ref, a2_w_ref, a2_b_ref,
                  fc_w_ref, fc_b_ref, out_ref):
    BB, T, FP = frames_ref.shape
    M = BB * T

    # ---- learned frame frontend: (BB*T, FRAME_PAD) -> (BB*T, CH) ----
    x = frames_ref[...].reshape(M, FP)                               # bf16, leading-dim merge
    h = jnp.maximum(_dot(x, fb_w_ref[...]) + fb_b_ref[...], 0.0)     # (M, CH) f32

    # per-row "time index within its sequence": built once, reused by all three conv layers
    t_idx = lax.broadcasted_iota(jnp.int32, (M, CH), 0) % T

    # ---- dilated TDNN stack (ECAPA-style kernel/dilation pattern) ----
    h = _conv1d_same(h, c1_w_ref[...], c1_b_ref[...], k=5, d=1, T=T, t_idx=t_idx)
    h = _conv1d_same(h, c2_w_ref[...], c2_b_ref[...], k=3, d=2, T=T, t_idx=t_idx)
    h = _conv1d_same(h, c3_w_ref[...], c3_b_ref[...], k=3, d=3, T=T, t_idx=t_idx)

    # ---- attentive statistics pooling (softmax over time, per sequence) ----
    a = jnp.tanh(_dot(h, a1_w_ref[...]) + a1_b_ref[...])             # (M, ATT)
    e = _dot(a, a2_w_ref[...]) + a2_b_ref[...]                       # (M, CH)
    e = e - jnp.max(e, axis=0, keepdims=True)     # shared column max: still a stable softmax shift
    ew = jnp.exp(e).reshape(BB, T, CH)
    h3 = h.reshape(BB, T, CH)
    denom = jnp.sum(ew, axis=1, keepdims=True)                       # (BB, 1, CH)
    alpha = ew * pl.reciprocal(denom, approx=True)                   # per-sequence softmax (EUP)
    mu = jnp.sum(alpha * h3, axis=1, keepdims=True)                  # (BB, 1, CH)
    var = jnp.sum(alpha * (h3 - mu) ** 2, axis=1, keepdims=True)     # stable variance form
    sg = jnp.sqrt(jnp.maximum(var, EPS))
    pooled = jnp.concatenate([mu.reshape(BB, CH), sg.reshape(BB, CH)], axis=1)   # (BB, 2*CH)

    # ---- embedding FC (padded to OUT_PAD lanes; sliced back in the wrapper) ----
    emb = _dot(pooled, fc_w_ref[...]) + fc_b_ref[...]                # (BB, OUT_PAD)
    out_ref[...] = emb.astype(out_ref.dtype)


# ---------------------------------------------------------------------------
# Parameters (deterministic, synthetic; weights stored bf16, biases f32)
# ---------------------------------------------------------------------------
def init_params(key):
    ks = jax.random.split(key, 8)
    s = 0.05
    bf = lambda w: w.astype(MXU_DTYPE)

    def conv_w(k_, kk, cin, cout):
        w = s * jax.random.normal(k_, (kk, cin, cout), jnp.float32)
        return bf(w.reshape(kk * cin, cout))             # tap-major im2col layout

    fb_core = s * jax.random.normal(ks[0], (FRAME_LEN, CH), jnp.float32)
    fb_w = bf(jnp.pad(fb_core, ((0, FRAME_PAD - FRAME_LEN), (0, 0))))   # K padded 80 -> 128
    fc_core = s * jax.random.normal(ks[6], (2 * CH, NUM_OUT), jnp.float32)
    fc_w = bf(jnp.pad(fc_core, ((0, 0), (0, OUT_PAD - NUM_OUT))))       # lane-dense FC output
    return {
        'fb_w': fb_w, 'fb_b': jnp.zeros((1, CH), jnp.float32),
        'c1_w': conv_w(ks[1], 5, CH, CH), 'c1_b': jnp.zeros((1, CH), jnp.float32),
        'c2_w': conv_w(ks[2], 3, CH, CH), 'c2_b': jnp.zeros((1, CH), jnp.float32),
        'c3_w': conv_w(ks[3], 3, CH, CH), 'c3_b': jnp.zeros((1, CH), jnp.float32),
        'att_w1': bf(s * jax.random.normal(ks[4], (CH, ATT), jnp.float32)),
        'att_b1': jnp.zeros((1, ATT), jnp.float32),
        'att_w2': bf(s * jax.random.normal(ks[5], (ATT, CH), jnp.float32)),
        'att_b2': jnp.zeros((1, CH), jnp.float32),
        'fc_w': fc_w, 'fc_b': jnp.zeros((1, OUT_PAD), jnp.float32),
    }


# ---------------------------------------------------------------------------
# Forward wrapper — matches SpeakerNet.forward: data.reshape(-1, last_dim) -> __S__(x, aug=False)
# ---------------------------------------------------------------------------
def speakernet_forward(params, data, *, block_b=DEFAULT_BB):
    x = data.reshape(-1, data.shape[-1])                     # (B, T_samples)
    B, Ts = x.shape
    F = Ts // FRAME_LEN
    frames = x[:, :F * FRAME_LEN].reshape(B, F, FRAME_LEN)   # (B, T_frames, FRAME_LEN)
    # one-time host pads: lane-dense frame dim (80 -> 128) and batch rounded up to the block
    frames = jnp.pad(frames, ((0, 0), (0, 0), (0, FRAME_PAD - FRAME_LEN)))

    BB = max(1, min(block_b, B))                 # v5e: pass block_b=8 (M=128 saturates 4x128 MXU)
    n_blk = pl.cdiv(B, BB)                       # v7x: keep n_blk >= 2 (and even) for both TCs
    Bpad = n_blk * BB
    if Bpad != B:
        frames = jnp.pad(frames, ((0, Bpad - B), (0, 0), (0, 0)))
    frames = frames.astype(MXU_DTYPE)            # halve input DMA; matmul operand is bf16 anyway

    rep = lambda b: (0, 0)                       # weights: constant block index -> VMEM-resident
    wspec = lambda shape: pl.BlockSpec(shape, rep)

    out = pl.pallas_call(
        _fused_kernel,
        out_shape=jax.ShapeDtypeStruct((Bpad, OUT_PAD), jnp.float32),
        grid=(n_blk,),
        in_specs=[
            pl.BlockSpec((BB, F, FRAME_PAD), lambda b: (b, 0, 0)),
            wspec((FRAME_PAD, CH)), wspec((1, CH)),
            wspec((5 * CH, CH)), wspec((1, CH)),
            wspec((3 * CH, CH)), wspec((1, CH)),
            wspec((3 * CH, CH)), wspec((1, CH)),
            wspec((CH, ATT)), wspec((1, ATT)),
            wspec((ATT, CH)), wspec((1, CH)),
            wspec((2 * CH, OUT_PAD)), wspec((1, OUT_PAD)),
        ],
        out_specs=pl.BlockSpec((BB, OUT_PAD), lambda b: (b, 0)),
        compiler_params=pltpu.CompilerParams(
            dimension_semantics=("parallel",)),  # shard batch blocks across TensorCores (v7x)
    )(frames,
      params['fb_w'], params['fb_b'],
      params['c1_w'], params['c1_b'],
      params['c2_w'], params['c2_b'],
      params['c3_w'], params['c3_b'],
      params['att_w1'], params['att_b1'],
      params['att_w2'], params['att_b2'],
      params['fc_w'], params['fc_b'])

    return out[:B, :NUM_OUT]                     # drop batch padding and un-pad the embedding


if __name__ == "__main__":
    key = jax.random.PRNGKey(0)
    k_in, k_par = jax.random.split(key)

    # data: (batch=2, eval_segments=2, samples=1280) -> reshape(-1, 1280) = (4, 1280)
    data = jax.random.normal(k_in, (2, 2, 1280), jnp.float32)
    params = init_params(k_par)

    fwd = jax.jit(speakernet_forward)
    emb = jax.block_until_ready(fwd(params, data))

    assert emb.shape == (4, NUM_OUT), emb.shape
    assert bool(jnp.all(jnp.isfinite(emb)))
    print("KERNEL_OK")
</pallas_src>

<mosaic_0001>
module attributes {stable_mosaic.version = 11 : i64} {
  func.func @_fused_kernel(%arg0: i32, %arg1: memref<4x16x128xbf16, #tpu.memory_space<vmem>>, %arg2: memref<128x128xbf16, #tpu.memory_space<vmem>>, %arg3: memref<1x128xf32, #tpu.memory_space<vmem>>, %arg4: memref<640x128xbf16, #tpu.memory_space<vmem>>, %arg5: memref<1x128xf32, #tpu.memory_space<vmem>>, %arg6: memref<384x128xbf16, #tpu.memory_space<vmem>>, %arg7: memref<1x128xf32, #tpu.memory_space<vmem>>, %arg8: memref<384x128xbf16, #tpu.memory_space<vmem>>, %arg9: memref<1x128xf32, #tpu.memory_space<vmem>>, %arg10: memref<128x128xbf16, #tpu.memory_space<vmem>>, %arg11: memref<1x128xf32, #tpu.memory_space<vmem>>, %arg12: memref<128x128xbf16, #tpu.memory_space<vmem>>, %arg13: memref<1x128xf32, #tpu.memory_space<vmem>>, %arg14: memref<256x256xbf16, #tpu.memory_space<vmem>>, %arg15: memref<1x256xf32, #tpu.memory_space<vmem>>, %arg16: memref<4x256xf32, #tpu.memory_space<vmem>>) attributes {dimension_semantics = [#tpu.dimension_semantics<parallel>], iteration_bounds = array<i64: 1>, scalar_prefetch = 0 : i64, scratch_operands = 0 : i64, tpu.core_type = #tpu.core_type<tc>, window_params = [{transform_indices = @transform_0, window_bounds = array<i64: 4, 16, 128>}, {pipeline_mode = #tpu.pipeline_mode<synchronous>, transform_indices = @transform_1, window_bounds = array<i64: 128, 128>}, {pipeline_mode = #tpu.pipeline_mode<synchronous>, transform_indices = @transform_2, window_bounds = array<i64: 1, 128>}, {pipeline_mode = #tpu.pipeline_mode<synchronous>, transform_indices = @transform_3, window_bounds = array<i64: 640, 128>}, {pipeline_mode = #tpu.pipeline_mode<synchronous>, transform_indices = @transform_4, window_bounds = array<i64: 1, 128>}, {pipeline_mode = #tpu.pipeline_mode<synchronous>, transform_indices = @transform_5, window_bounds = array<i64: 384, 128>}, {pipeline_mode = #tpu.pipeline_mode<synchronous>, transform_indices = @transform_6, window_bounds = array<i64: 1, 128>}, {pipeline_mode = #tpu.pipeline_mode<synchronous>, transform_indices = @transform_7, window_bounds = array<i64: 384, 128>}, {pipeline_mode = #tpu.pipeline_mode<synchronous>, transform_indices = @transform_8, window_bounds = array<i64: 1, 128>}, {pipeline_mode = #tpu.pipeline_mode<synchronous>, transform_indices = @transform_9, window_bounds = array<i64: 128, 128>}, {pipeline_mode = #tpu.pipeline_mode<synchronous>, transform_indices = @transform_10, window_bounds = array<i64: 1, 128>}, {pipeline_mode = #tpu.pipeline_mode<synchronous>, transform_indices = @transform_11, window_bounds = array<i64: 128, 128>}, {pipeline_mode = #tpu.pipeline_mode<synchronous>, transform_indices = @transform_12, window_bounds = array<i64: 1, 128>}, {pipeline_mode = #tpu.pipeline_mode<synchronous>, transform_indices = @transform_13, window_bounds = array<i64: 256, 256>}, {pipeline_mode = #tpu.pipeline_mode<synchronous>, transform_indices = @transform_14, window_bounds = array<i64: 1, 256>}, {transform_indices = @transform_15, window_bounds = array<i64: 4, 256>}]} {
    %c0 = arith.constant 0 : index
    %c0_0 = arith.constant 0 : index
    %c0_1 = arith.constant 0 : index
    %0 = vector.load %arg1[%c0, %c0_0, %c0_1] : memref<4x16x128xbf16, #tpu.memory_space<vmem>>, vector<4x16x128xbf16>
    %1 = vector.shape_cast %0 : vector<4x16x128xbf16> to vector<64x128xbf16>
    %c0_2 = arith.constant 0 : index
    %c0_3 = arith.constant 0 : index
    %2 = vector.load %arg2[%c0_2, %c0_3] : memref<128x128xbf16, #tpu.memory_space<vmem>>, vector<128x128xbf16>
    %cst = arith.constant dense<0.000000e+00> : vector<64x128xf32>
    %3 = tpu.matmul %1, %2, %cst {dimension_numbers = #tpu.dot_dimension_numbers<[1], [0], [0], [1], [0, 0, 1, 1], [], []>} : vector<64x128xbf16>, vector<128x128xbf16>, vector<64x128xf32> -> vector<64x128xf32>
    %c0_4 = arith.constant 0 : index
    %c0_5 = arith.constant 0 : index
    %4 = vector.load %arg3[%c0_4, %c0_5] : memref<1x128xf32, #tpu.memory_space<vmem>>, vector<1x128xf32>
    %5 = vector.broadcast %4 : vector<1x128xf32> to vector<64x128xf32>
    %6 = arith.addf %3, %5 : vector<64x128xf32>
    %cst_6 = arith.constant 0.000000e+00 : f32
    %7 = vector.broadcast %cst_6 : f32 to vector<64x128xf32>
    %8 = arith.maximumf %6, %7 : vector<64x128xf32>
    %9 = tpu.iota {dimensions = array<i32: 0>} : vector<64x128xi32>
    %c16_i32 = arith.constant 16 : i32
    %c0_i32 = arith.constant 0 : i32
    %10 = arith.cmpi eq, %c16_i32, %c0_i32 : i32
    %c1_i32 = arith.constant 1 : i32
    %11 = arith.select %10, %c1_i32, %c16_i32 : i32
    %12 = vector.broadcast %11 : i32 to vector<64x128xi32>
    %13 = arith.remsi %9, %12 : vector<64x128xi32>
    %c0_i32_7 = arith.constant 0 : i32
    %14 = vector.broadcast %c0_i32_7 : i32 to vector<64x128xi32>
    %15 = arith.cmpi ne, %13, %14 : vector<64x128xi32>
    %c0_i32_8 = arith.constant 0 : i32
    %16 = vector.broadcast %c0_i32_8 : i32 to vector<64x128xi32>
    %17 = arith.cmpi slt, %13, %16 : vector<64x128xi32>
    %c0_i32_9 = arith.constant 0 : i32
    %18 = arith.cmpi slt, %11, %c0_i32_9 : i32
    %19 = vector.broadcast %18 : i1 to vector<64x128xi1>
    %20 = vector.broadcast %19 : vector<64x128xi1> to vector<64x128xi1>
    %21 = arith.xori %17, %20 : vector<64x128xi1>
    %22 = arith.andi %21, %15 : vector<64x128xi1>
    %23 = vector.broadcast %11 : i32 to vector<64x128xi32>
    %24 = arith.addi %13, %23 : vector<64x128xi32>
    %25 = arith.select %22, %24, %13 : vector<64x128xi1>, vector<64x128xi32>
    %c0_10 = arith.constant 0 : index
    %c0_11 = arith.constant 0 : index
    %26 = vector.load %arg4[%c0_10, %c0_11] : memref<640x128xbf16, #tpu.memory_space<vmem>>, vector<640x128xbf16>
    %c0_12 = arith.constant 0 : index
    %c0_13 = arith.constant 0 : index
    %27 = vector.load %arg5[%c0_12, %c0_13] : memref<1x128xf32, #tpu.memory_space<vmem>>, vector<1x128xf32>
    %c2_i32 = arith.constant 2 : i32
    %28 = tpu.dynamic_rotate %8 by %c2_i32 dim 0 : vector<64x128xf32>, i32 -> vector<64x128xf32>
    %c-2_i32 = arith.constant -2 : i32
    %29 = vector.broadcast %c-2_i32 : i32 to vector<64x128xi32>
    %30 = arith.addi %25, %29 : vector<64x128xi32>
    %c0_i32_14 = arith.constant 0 : i32
    %31 = vector.broadcast %c0_i32_14 : i32 to vector<64x128xi32>
    %32 = arith.cmpi sge, %30, %31 : vector<64x128xi32>
    %c-2_i32_15 = arith.constant -2 : i32
    %33 = vector.broadcast %c-2_i32_15 : i32 to vector<64x128xi32>
    %34 = arith.addi %25, %33 : vector<64x128xi32>
    %c16_i32_16 = arith.constant 16 : i32
    %35 = vector.broadcast %c16_i32_16 : i32 to vector<64x128xi32>
    %36 = arith.cmpi slt, %34, %35 : vector<64x128xi32>
    %37 = arith.andi %32, %36 : vector<64x128xi1>
    %cst_17 = arith.constant 0.000000e+00 : f32
    %38 = vector.broadcast %cst_17 : f32 to vector<64x128xf32>
    %39 = arith.select %37, %28, %38 : vector<64x128xi1>, vector<64x128xf32>
    %c1_i32_18 = arith.constant 1 : i32
    %40 = tpu.dynamic_rotate %8 by %c1_i32_18 dim 0 : vector<64x128xf32>, i32 -> vector<64x128xf32>
    %c-1_i32 = arith.constant -1 : i32
    %41 = vector.broadcast %c-1_i32 : i32 to vector<64x128xi32>
    %42 = arith.addi %25, %41 : vector<64x128xi32>
    %c0_i32_19 = arith.constant 0 : i32
    %43 = vector.broadcast %c0_i32_19 : i32 to vector<64x128xi32>
    %44 = arith.cmpi sge, %42, %43 : vector<64x128xi32>
    %c-1_i32_20 = arith.constant -1 : i32
    %45 = vector.broadcast %c-1_i32_20 : i32 to vector<64x128xi32>
    %46 = arith.addi %25, %45 : vector<64x128xi32>
    %c16_i32_21 = arith.constant 16 : i32
    %47 = vector.broadcast %c16_i32_21 : i32 to vector<64x128xi32>
    %48 = arith.cmpi slt, %46, %47 : vector<64x128xi32>
    %49 = arith.andi %44, %48 : vector<64x128xi1>
    %cst_22 = arith.constant 0.000000e+00 : f32
    %50 = vector.broadcast %cst_22 : f32 to vector<64x128xf32>
    %51 = arith.select %49, %40, %50 : vector<64x128xi1>, vector<64x128xf32>
    %c0_i32_23 = arith.constant 0 : i32
    %52 = vector.broadcast %c0_i32_23 : i32 to vector<64x128xi32>
    %53 = arith.addi %25, %52 : vector<64x128xi32>
    %c0_i32_24 = arith.constant 0 : i32
    %54 = vector.broadcast %c0_i32_24 : i32 to vector<64x128xi32>
    %55 = arith.cmpi sge, %53, %54 : vector<64x128xi32>
    %c0_i32_25 = arith.constant 0 : i32
    %56 = vector.broadcast %c0_i32_25 : i32 to vector<64x128xi32>
    %57 = arith.addi %25, %56 : vector<64x128xi32>
    %c16_i32_26 = arith.constant 16 : i32
    %58 = vector.broadcast %c16_i32_26 : i32 to vector<64x128xi32>
    %59 = arith.cmpi slt, %57, %58 : vector<64x128xi32>
    %60 = arith.andi %55, %59 : vector<64x128xi1>
    %cst_27 = arith.constant 0.000000e+00 : f32
    %61 = vector.broadcast %cst_27 : f32 to vector<64x128xf32>
    %62 = arith.select %60, %8, %61 : vector<64x128xi1>, vector<64x128xf32>
    %c63_i32 = arith.constant 63 : i32
    %63 = tpu.dynamic_rotate %8 by %c63_i32 dim 0 : vector<64x128xf32>, i32 -> vector<64x128xf32>
    %c1_i32_28 = arith.constant 1 : i32
    %64 = vector.broadcast %c1_i32_28 : i32 to vector<64x128xi32>
    %65 = arith.addi %25, %64 : vector<64x128xi32>
    %c0_i32_29 = arith.constant 0 : i32
    %66 = vector.broadcast %c0_i32_29 : i32 to vector<64x128xi32>
    %67 = arith.cmpi sge, %65, %66 : vector<64x128xi32>
    %c1_i32_30 = arith.constant 1 : i32
    %68 = vector.broadcast %c1_i32_30 : i32 to vector<64x128xi32>
    %69 = arith.addi %25, %68 : vector<64x128xi32>
    %c16_i32_31 = arith.constant 16 : i32
    %70 = vector.broadcast %c16_i32_31 : i32 to vector<64x128xi32>
    %71 = arith.cmpi slt, %69, %70 : vector<64x128xi32>
    %72 = arith.andi %67, %71 : vector<64x128xi1>
    %cst_32 = arith.constant 0.000000e+00 : f32
    %73 = vector.broadcast %cst_32 : f32 to vector<64x128xf32>
    %74 = arith.select %72, %63, %73 : vector<64x128xi1>, vector<64x128xf32>
    %c62_i32 = arith.constant 62 : i32
    %75 = tpu.dynamic_rotate %8 by %c62_i32 dim 0 : vector<64x128xf32>, i32 -> vector<64x128xf32>
    %c2_i32_33 = arith.constant 2 : i32
    %76 = vector.broadcast %c2_i32_33 : i32 to vector<64x128xi32>
    %77 = arith.addi %25, %76 : vector<64x128xi32>
    %c0_i32_34 = arith.constant 0 : i32
    %78 = vector.broadcast %c0_i32_34 : i32 to vector<64x128xi32>
    %79 = arith.cmpi sge, %77, %78 : vector<64x128xi32>
    %c2_i32_35 = arith.constant 2 : i32
    %80 = vector.broadcast %c2_i32_35 : i32 to vector<64x128xi32>
    %81 = arith.addi %25, %80 : vector<64x128xi32>
    %c16_i32_36 = arith.constant 16 : i32
    %82 = vector.broadcast %c16_i32_36 : i32 to vector<64x128xi32>
    %83 = arith.cmpi slt, %81, %82 : vector<64x128xi32>
    %84 = arith.andi %79, %83 : vector<64x128xi1>
    %cst_37 = arith.constant 0.000000e+00 : f32
    %85 = vector.broadcast %cst_37 : f32 to vector<64x128xf32>
    %86 = arith.select %84, %75, %85 : vector<64x128xi1>, vector<64x128xf32>
    %87 = tpu.concatenate %39, %51, %62, %74, %86 in 1 : vector<64x128xf32>, vector<64x128xf32>, vector<64x128xf32>, vector<64x128xf32>, vector<64x128xf32> -> vector<64x640xf32>
    %88 = arith.truncf %87 : vector<64x640xf32> to vector<64x640xbf16>
    %cst_38 = arith.constant dense<0.000000e+00> : vector<64x128xf32>
    %89 = tpu.matmul %88, %26, %cst_38 {dimension_numbers = #tpu.dot_dimension_numbers<[1], [0], [0], [1], [0, 0, 1, 1], [], []>} : vector<64x640xbf16>, vector<640x128xbf16>, vector<64x128xf32> -> vector<64x128xf32>
    %90 = vector.broadcast %27 : vector<1x128xf32> to vector<64x128xf32>
    %91 = arith.addf %89, %90 : vector<64x128xf32>
    %cst_39 = arith.constant 0.000000e+00 : f32
    %92 = vector.broadcast %cst_39 : f32 to vector<64x128xf32>
    %93 = arith.maximumf %91, %92 : vector<64x128xf32>
    %c0_40 = arith.constant 0 : index
    %c0_41 = arith.constant 0 : index
    %94 = vector.load %arg6[%c0_40, %c0_41] : memref<384x128xbf16, #tpu.memory_space<vmem>>, vector<384x128xbf16>
    %c0_42 = arith.constant 0 : index
    %c0_43 = arith.constant 0 : index
    %95 = vector.load %arg7[%c0_42, %c0_43] : memref<1x128xf32, #tpu.memory_space<vmem>>, vector<1x128xf32>
    %c2_i32_44 = arith.constant 2 : i32
    %96 = tpu.dynamic_rotate %93 by %c2_i32_44 dim 0 : vector<64x128xf32>, i32 -> vector<64x128xf32>
    %c-2_i32_45 = arith.constant -2 : i32
    %97 = vector.broadcast %c-2_i32_45 : i32 to vector<64x128xi32>
    %98 = arith.addi %25, %97 : vector<64x128xi32>
    %c0_i32_46 = arith.constant 0 : i32
    %99 = vector.broadcast %c0_i32_46 : i32 to vector<64x128xi32>
    %100 = arith.cmpi sge, %98, %99 : vector<64x128xi32>
    %c-2_i32_47 = arith.constant -2 : i32
    %101 = vector.broadcast %c-2_i32_47 : i32 to vector<64x128xi32>
    %102 = arith.addi %25, %101 : vector<64x128xi32>
    %c16_i32_48 = arith.constant 16 : i32
    %103 = vector.broadcast %c16_i32_48 : i32 to vector<64x128xi32>
    %104 = arith.cmpi slt, %102, %103 : vector<64x128xi32>
    %105 = arith.andi %100, %104 : vector<64x128xi1>
    %cst_49 = arith.constant 0.000000e+00 : f32
    %106 = vector.broadcast %cst_49 : f32 to vector<64x128xf32>
    %107 = arith.select %105, %96, %106 : vector<64x128xi1>, vector<64x128xf32>
    %c0_i32_50 = arith.constant 0 : i32
    %108 = vector.broadcast %c0_i32_50 : i32 to vector<64x128xi32>
    %109 = arith.addi %25, %108 : vector<64x128xi32>
    %c0_i32_51 = arith.constant 0 : i32
    %110 = vector.broadcast %c0_i32_51 : i32 to vector<64x128xi32>
    %111 = arith.cmpi sge, %109, %110 : vector<64x128xi32>
    %c0_i32_52 = arith.constant 0 : i32
    %112 = vector.broadcast %c0_i32_52 : i32 to vector<64x128xi32>
    %113 = arith.addi %25, %112 : vector<64x128xi32>
    %c16_i32_53 = arith.constant 16 : i32
    %114 = vector.broadcast %c16_i32_53 : i32 to vector<64x128xi32>
    %115 = arith.cmpi slt, %113, %114 : vector<64x128xi32>
    %116 = arith.andi %111, %115 : vector<64x128xi1>
    %cst_54 = arith.constant 0.000000e+00 : f32
    %117 = vector.broadcast %cst_54 : f32 to vector<64x128xf32>
    %118 = arith.select %116, %93, %117 : vector<64x128xi1>, vector<64x128xf32>
    %c62_i32_55 = arith.constant 62 : i32
    %119 = tpu.dynamic_rotate %93 by %c62_i32_55 dim 0 : vector<64x128xf32>, i32 -> vector<64x128xf32>
    %c2_i32_56 = arith.constant 2 : i32
    %120 = vector.broadcast %c2_i32_56 : i32 to vector<64x128xi32>
    %121 = arith.addi %25, %120 : vector<64x128xi32>
    %c0_i32_57 = arith.constant 0 : i32
    %122 = vector.broadcast %c0_i32_57 : i32 to vector<64x128xi32>
    %123 = arith.cmpi sge, %121, %122 : vector<64x128xi32>
    %c2_i32_58 = arith.constant 2 : i32
    %124 = vector.broadcast %c2_i32_58 : i32 to vector<64x128xi32>
    %125 = arith.addi %25, %124 : vector<64x128xi32>
    %c16_i32_59 = arith.constant 16 : i32
    %126 = vector.broadcast %c16_i32_59 : i32 to vector<64x128xi32>
    %127 = arith.cmpi slt, %125, %126 : vector<64x128xi32>
    %128 = arith.andi %123, %127 : vector<64x128xi1>
    %cst_60 = arith.constant 0.000000e+00 : f32
    %129 = vector.broadcast %cst_60 : f32 to vector<64x128xf32>
    %130 = arith.select %128, %119, %129 : vector<64x128xi1>, vector<64x128xf32>
    %131 = tpu.concatenate %107, %118, %130 in 1 : vector<64x128xf32>, vector<64x128xf32>, vector<64x128xf32> -> vector<64x384xf32>
    %132 = arith.truncf %131 : vector<64x384xf32> to vector<64x384xbf16>
    %cst_61 = arith.constant dense<0.000000e+00> : vector<64x128xf32>
    %133 = tpu.matmul %132, %94, %cst_61 {dimension_numbers = #tpu.dot_dimension_numbers<[1], [0], [0], [1], [0, 0, 1, 1], [], []>} : vector<64x384xbf16>, vector<384x128xbf16>, vector<64x128xf32> -> vector<64x128xf32>
    %134 = vector.broadcast %95 : vector<1x128xf32> to vector<64x128xf32>
    %135 = arith.addf %133, %134 : vector<64x128xf32>
    %cst_62 = arith.constant 0.000000e+00 : f32
    %136 = vector.broadcast %cst_62 : f32 to vector<64x128xf32>
    %137 = arith.maximumf %135, %136 : vector<64x128xf32>
    %c0_63 = arith.constant 0 : index
    %c0_64 = arith.constant 0 : index
    %138 = vector.load %arg8[%c0_63, %c0_64] : memref<384x128xbf16, #tpu.memory_space<vmem>>, vector<384x128xbf16>
    %c0_65 = arith.constant 0 : index
    %c0_66 = arith.constant 0 : index
    %139 = vector.load %arg9[%c0_65, %c0_66] : memref<1x128xf32, #tpu.memory_space<vmem>>, vector<1x128xf32>
    %c3_i32 = arith.constant 3 : i32
    %140 = tpu.dynamic_rotate %137 by %c3_i32 dim 0 : vector<64x128xf32>, i32 -> vector<64x128xf32>
    %c-3_i32 = arith.constant -3 : i32
    %141 = vector.broadcast %c-3_i32 : i32 to vector<64x128xi32>
    %142 = arith.addi %25, %141 : vector<64x128xi32>
    %c0_i32_67 = arith.constant 0 : i32
    %143 = vector.broadcast %c0_i32_67 : i32 to vector<64x128xi32>
    %144 = arith.cmpi sge, %142, %143 : vector<64x128xi32>
    %c-3_i32_68 = arith.constant -3 : i32
    %145 = vector.broadcast %c-3_i32_68 : i32 to vector<64x128xi32>
    %146 = arith.addi %25, %145 : vector<64x128xi32>
    %c16_i32_69 = arith.constant 16 : i32
    %147 = vector.broadcast %c16_i32_69 : i32 to vector<64x128xi32>
    %148 = arith.cmpi slt, %146, %147 : vector<64x128xi32>
    %149 = arith.andi %144, %148 : vector<64x128xi1>
    %cst_70 = arith.constant 0.000000e+00 : f32
    %150 = vector.broadcast %cst_70 : f32 to vector<64x128xf32>
    %151 = arith.select %149, %140, %150 : vector<64x128xi1>, vector<64x128xf32>
    %c0_i32_71 = arith.constant 0 : i32
    %152 = vector.broadcast %c0_i32_71 : i32 to vector<64x128xi32>
    %153 = arith.addi %25, %152 : vector<64x128xi32>
    %c0_i32_72 = arith.constant 0 : i32
    %154 = vector.broadcast %c0_i32_72 : i32 to vector<64x128xi32>
    %155 = arith.cmpi sge, %153, %154 : vector<64x128xi32>
    %c0_i32_73 = arith.constant 0 : i32
    %156 = vector.broadcast %c0_i32_73 : i32 to vector<64x128xi32>
    %157 = arith.addi %25, %156 : vector<64x128xi32>
    %c16_i32_74 = arith.constant 16 : i32
    %158 = vector.broadcast %c16_i32_74 : i32 to vector<64x128xi32>
    %159 = arith.cmpi slt, %157, %158 : vector<64x128xi32>
    %160 = arith.andi %155, %159 : vector<64x128xi1>
    %cst_75 = arith.constant 0.000000e+00 : f32
    %161 = vector.broadcast %cst_75 : f32 to vector<64x128xf32>
    %162 = arith.select %160, %137, %161 : vector<64x128xi1>, vector<64x128xf32>
    %c61_i32 = arith.constant 61 : i32
    %163 = tpu.dynamic_rotate %137 by %c61_i32 dim 0 : vector<64x128xf32>, i32 -> vector<64x128xf32>
    %c3_i32_76 = arith.constant 3 : i32
    %164 = vector.broadcast %c3_i32_76 : i32 to vector<64x128xi32>
    %165 = arith.addi %25, %164 : vector<64x128xi32>
    %c0_i32_77 = arith.constant 0 : i32
    %166 = vector.broadcast %c0_i32_77 : i32 to vector<64x128xi32>
    %167 = arith.cmpi sge, %165, %166 : vector<64x128xi32>
    %c3_i32_78 = arith.constant 3 : i32
    %168 = vector.broadcast %c3_i32_78 : i32 to vector<64x128xi32>
    %169 = arith.addi %25, %168 : vector<64x128xi32>
    %c16_i32_79 = arith.constant 16 : i32
    %170 = vector.broadcast %c16_i32_79 : i32 to vector<64x128xi32>
    %171 = arith.cmpi slt, %169, %170 : vector<64x128xi32>
    %172 = arith.andi %167, %171 : vector<64x128xi1>
    %cst_80 = arith.constant 0.000000e+00 : f32
    %173 = vector.broadcast %cst_80 : f32 to vector<64x128xf32>
    %174 = arith.select %172, %163, %173 : vector<64x128xi1>, vector<64x128xf32>
    %175 = tpu.concatenate %151, %162, %174 in 1 : vector<64x128xf32>, vector<64x128xf32>, vector<64x128xf32> -> vector<64x384xf32>
    %176 = arith.truncf %175 : vector<64x384xf32> to vector<64x384xbf16>
    %cst_81 = arith.constant dense<0.000000e+00> : vector<64x128xf32>
    %177 = tpu.matmul %176, %138, %cst_81 {dimension_numbers = #tpu.dot_dimension_numbers<[1], [0], [0], [1], [0, 0, 1, 1], [], []>} : vector<64x384xbf16>, vector<384x128xbf16>, vector<64x128xf32> -> vector<64x128xf32>
    %178 = vector.broadcast %139 : vector<1x128xf32> to vector<64x128xf32>
    %179 = arith.addf %177, %178 : vector<64x128xf32>
    %cst_82 = arith.constant 0.000000e+00 : f32
    %180 = vector.broadcast %cst_82 : f32 to vector<64x128xf32>
    %181 = arith.maximumf %179, %180 : vector<64x128xf32>
    %c0_83 = arith.constant 0 : index
    %c0_84 = arith.constant 0 : index
    %182 = vector.load %arg10[%c0_83, %c0_84] : memref<128x128xbf16, #tpu.memory_space<vmem>>, vector<128x128xbf16>
    %183 = arith.truncf %181 : vector<64x128xf32> to vector<64x128xbf16>
    %cst_85 = arith.constant dense<0.000000e+00> : vector<64x128xf32>
    %184 = tpu.matmul %183, %182, %cst_85 {dimension_numbers = #tpu.dot_dimension_numbers<[1], [0], [0], [1], [0, 0, 1, 1], [], []>} : vector<64x128xbf16>, vector<128x128xbf16>, vector<64x128xf32> -> vector<64x128xf32>
    %c0_86 = arith.constant 0 : index
    %c0_87 = arith.constant 0 : index
    %185 = vector.load %arg11[%c0_86, %c0_87] : memref<1x128xf32, #tpu.memory_space<vmem>>, vector<1x128xf32>
    %186 = vector.broadcast %185 : vector<1x128xf32> to vector<64x128xf32>
    %187 = arith.addf %184, %186 : vector<64x128xf32>
    %188 = math.tanh %187 : vector<64x128xf32>
    %c0_88 = arith.constant 0 : index
    %c0_89 = arith.constant 0 : index
    %189 = vector.load %arg12[%c0_88, %c0_89] : memref<128x128xbf16, #tpu.memory_space<vmem>>, vector<128x128xbf16>
    %190 = arith.truncf %188 : vector<64x128xf32> to vector<64x128xbf16>
    %cst_90 = arith.constant dense<0.000000e+00> : vector<64x128xf32>
    %191 = tpu.matmul %190, %189, %cst_90 {dimension_numbers = #tpu.dot_dimension_numbers<[1], [0], [0], [1], [0, 0, 1, 1], [], []>} : vector<64x128xbf16>, vector<128x128xbf16>, vector<64x128xf32> -> vector<64x128xf32>
    %c0_91 = arith.constant 0 : index
    %c0_92 = arith.constant 0 : index
    %192 = vector.load %arg13[%c0_91, %c0_92] : memref<1x128xf32, #tpu.memory_space<vmem>>, vector<1x128xf32>
    %193 = vector.broadcast %192 : vector<1x128xf32> to vector<64x128xf32>
    %194 = arith.addf %191, %193 : vector<64x128xf32>
    %cst_93 = arith.constant dense<0xFF800000> : vector<128xf32>
    %195 = vector.multi_reduction <maximumf>, %194, %cst_93 [0] : vector<64x128xf32> to vector<128xf32>
    %196 = vector.shape_cast %195 : vector<128xf32> to vector<1x128xf32>
    %197 = vector.broadcast %196 : vector<1x128xf32> to vector<64x128xf32>
    %198 = arith.subf %194, %197 : vector<64x128xf32>
    %199 = math.exp %198 : vector<64x128xf32>
    %200 = vector.shape_cast %199 : vector<64x128xf32> to vector<4x16x128xf32>
    %201 = vector.shape_cast %181 : vector<64x128xf32> to vector<4x16x128xf32>
    %cst_94 = arith.constant dense<0.000000e+00> : vector<4x128xf32>
    %202 = vector.multi_reduction <add>, %200, %cst_94 [1] : vector<4x16x128xf32> to vector<4x128xf32>
    %203 = vector.shape_cast %202 : vector<4x128xf32> to vector<4x1x128xf32>
    %204 = tpu.reciprocal %203 {approx = true} : vector<4x1x128xf32> -> vector<4x1x128xf32>
    %205 = vector.broadcast %204 : vector<4x1x128xf32> to vector<4x16x128xf32>
    %206 = arith.mulf %200, %205 : vector<4x16x128xf32>
    %207 = arith.mulf %206, %201 : vector<4x16x128xf32>
    %cst_95 = arith.constant dense<0.000000e+00> : vector<4x128xf32>
    %208 = vector.multi_reduction <add>, %207, %cst_95 [1] : vector<4x16x128xf32> to vector<4x128xf32>
    %209 = vector.shape_cast %208 : vector<4x128xf32> to vector<4x1x128xf32>
    %210 = vector.broadcast %209 : vector<4x1x128xf32> to vector<4x16x128xf32>
    %211 = arith.subf %201, %210 : vector<4x16x128xf32>
    %212 = arith.mulf %211, %211 : vector<4x16x128xf32>
    %213 = arith.mulf %206, %212 : vector<4x16x128xf32>
    %cst_96 = arith.constant dense<0.000000e+00> : vector<4x128xf32>
    %214 = vector.multi_reduction <add>, %213, %cst_96 [1] : vector<4x16x128xf32> to vector<4x128xf32>
    %215 = vector.shape_cast %214 : vector<4x128xf32> to vector<4x1x128xf32>
    %cst_97 = arith.constant 9.99999974E-5 : f32
    %216 = vector.broadcast %cst_97 : f32 to vector<4x1x128xf32>
    %217 = arith.maximumf %215, %216 : vector<4x1x128xf32>
    %218 = math.sqrt %217 : vector<4x1x128xf32>
    %219 = vector.shape_cast %209 : vector<4x1x128xf32> to vector<4x128xf32>
    %220 = vector.shape_cast %218 : vector<4x1x128xf32> to vector<4x128xf32>
    %221 = tpu.concatenate %219, %220 in 1 : vector<4x128xf32>, vector<4x128xf32> -> vector<4x256xf32>
    %c0_98 = arith.constant 0 : index
    %c0_99 = arith.constant 0 : index
    %222 = vector.load %arg14[%c0_98, %c0_99] : memref<256x256xbf16, #tpu.memory_space<vmem>>, vector<256x256xbf16>
    %223 = arith.truncf %221 : vector<4x256xf32> to vector<4x256xbf16>
    %cst_100 = arith.constant dense<0.000000e+00> : vector<4x256xf32>
    %224 = tpu.matmul %223, %222, %cst_100 {dimension_numbers = #tpu.dot_dimension_numbers<[1], [0], [0], [1], [0, 0, 1, 1], [], []>} : vector<4x256xbf16>, vector<256x256xbf16>, vector<4x256xf32> -> vector<4x256xf32>
    %c0_101 = arith.constant 0 : index
    %c0_102 = arith.constant 0 : index
    %225 = vector.load %arg15[%c0_101, %c0_102] : memref<1x256xf32, #tpu.memory_space<vmem>>, vector<1x256xf32>
    %226 = vector.broadcast %225 : vector<1x256xf32> to vector<4x256xf32>
    %227 = arith.addf %224, %226 : vector<4x256xf32>
    %c0_103 = arith.constant 0 : index
    %c0_104 = arith.constant 0 : index
    %228 = vector.load %arg16[%c0_103, %c0_104] : memref<4x256xf32, #tpu.memory_space<vmem>>, vector<4x256xf32>
    tpu.vector_store %arg16[%c0_103, %c0_104], %227 {strides = array<i32>} : memref<4x256xf32, #tpu.memory_space<vmem>>, vector<4x256xf32>,
    return
  }
  func.func @transform_0(%arg0: i32) -> (i32, i32, i32) {
    %c0_i32 = arith.constant 0 : i32
    %c0_i32_0 = arith.constant 0 : i32
    %c0_i32_1 = arith.constant 0 : i32
    return %arg0, %c0_i32, %c0_i32_0 : i32, i32, i32
  }
  func.func @transform_1(%arg0: i32) -> (i32, i32) {
    %c0_i32 = arith.constant 0 : i32
    %c0_i32_0 = arith.constant 0 : i32
    %c0_i32_1 = arith.constant 0 : i32
    return %c0_i32, %c0_i32_0 : i32, i32
  }
  func.func @transform_2(%arg0: i32) -> (i32, i32) {
    %c0_i32 = arith.constant 0 : i32
    %c0_i32_0 = arith.constant 0 : i32
    %c0_i32_1 = arith.constant 0 : i32
    return %c0_i32, %c0_i32_0 : i32, i32
  }
  func.func @transform_3(%arg0: i32) -> (i32, i32) {
    %c0_i32 = arith.constant 0 : i32
    %c0_i32_0 = arith.constant 0 : i32
    %c0_i32_1 = arith.constant 0 : i32
    return %c0_i32, %c0_i32_0 : i32, i32
  }
  func.func @transform_4(%arg0: i32) -> (i32, i32) {
    %c0_i32 = arith.constant 0 : i32
    %c0_i32_0 = arith.constant 0 : i32
    %c0_i32_1 = arith.constant 0 : i32
    return %c0_i32, %c0_i32_0 : i32, i32
  }
  func.func @transform_5(%arg0: i32) -> (i32, i32) {
    %c0_i32 = arith.constant 0 : i32
    %c0_i32_0 = arith.constant 0 : i32
    %c0_i32_1 = arith.constant 0 : i32
    return %c0_i32, %c0_i32_0 : i32, i32
  }
  func.func @transform_6(%arg0: i32) -> (i32, i32) {
    %c0_i32 = arith.constant 0 : i32
    %c0_i32_0 = arith.constant 0 : i32
    %c0_i32_1 = arith.constant 0 : i32
    return %c0_i32, %c0_i32_0 : i32, i32
  }
  func.func @transform_7(%arg0: i32) -> (i32, i32) {
    %c0_i32 = arith.constant 0 : i32
    %c0_i32_0 = arith.constant 0 : i32
    %c0_i32_1 = arith.constant 0 : i32
    return %c0_i32, %c0_i32_0 : i32, i32
  }
  func.func @transform_8(%arg0: i32) -> (i32, i32) {
    %c0_i32 = arith.constant 0 : i32
    %c0_i32_0 = arith.constant 0 : i32
    %c0_i32_1 = arith.constant 0 : i32
    return %c0_i32, %c0_i32_0 : i32, i32
  }
  func.func @transform_9(%arg0: i32) -> (i32, i32) {
    %c0_i32 = arith.constant 0 : i32
    %c0_i32_0 = arith.constant 0 : i32
    %c0_i32_1 = arith.constant 0 : i32
    return %c0_i32, %c0_i32_0 : i32, i32
  }
  func.func @transform_10(%arg0: i32) -> (i32, i32) {
    %c0_i32 = arith.constant 0 : i32
    %c0_i32_0 = arith.constant 0 : i32
    %c0_i32_1 = arith.constant 0 : i32
    return %c0_i32, %c0_i32_0 : i32, i32
  }
  func.func @transform_11(%arg0: i32) -> (i32, i32) {
    %c0_i32 = arith.constant 0 : i32
    %c0_i32_0 = arith.constant 0 : i32
    %c0_i32_1 = arith.constant 0 : i32
    return %c0_i32, %c0_i32_0 : i32, i32
  }
  func.func @transform_12(%arg0: i32) -> (i32, i32) {
    %c0_i32 = arith.constant 0 : i32
    %c0_i32_0 = arith.constant 0 : i32
    %c0_i32_1 = arith.constant 0 : i32
    return %c0_i32, %c0_i32_0 : i32, i32
  }
  func.func @transform_13(%arg0: i32) -> (i32, i32) {
    %c0_i32 = arith.constant 0 : i32
    %c0_i32_0 = arith.constant 0 : i32
    %c0_i32_1 = arith.constant 0 : i32
    return %c0_i32, %c0_i32_0 : i32, i32
  }
  func.func @transform_14(%arg0: i32) -> (i32, i32) {
    %c0_i32 = arith.constant 0 : i32
    %c0_i32_0 = arith.constant 0 : i32
    %c0_i32_1 = arith.constant 0 : i32
    return %c0_i32, %c0_i32_0 : i32, i32
  }
  func.func @transform_15(%arg0: i32) -> (i32, i32) {
    %c0_i32 = arith.constant 0 : i32
    %c0_i32_0 = arith.constant 0 : i32
    return %arg0, %c0_i32 : i32, i32
  }
}

</mosaic_0001>

<bundles_post_ra>
// kernel: speakernet_forward.1
= control target key start
LH: loop header
LB: loop body
LE: loop exit
PB: predicated region body
PF: predicated region fallthrough
CT: control target
= control target key end

     0   :  { %20 = vsyncpa [#allocation3], 0  ;;  %s4502_s0 = inlined_call_operand.vmem [shape: bf16[4,16,128], index: 0, kind: input, shape index: {}]   ;;  %s4503_s1 = inlined_call_operand.vmem [shape: bf16[128,128], index: 1, kind: input, shape index: {}]   ;;  %s4504_s2 = inlined_call_operand.vmem [shape: f32[1,128], index: 2, kind: input, shape index: {}]   ;;  %s4505_s3 = inlined_call_operand.hbm [shape: bf16[640,128], index: 3, kind: input, shape index: {}]   ;;  %s4506_s4 = inlined_call_operand.vmem [shape: f32[1,128], index: 4, kind: input, shape index: {}]   ;;  %s4507_s5 = inlined_call_operand.hbm [shape: bf16[384,128], index: 5, kind: input, shape index: {}]   ;;  %s4508_s6 = inlined_call_operand.vmem [shape: f32[1,128], index: 6, kind: input, shape index: {}]   ;;  %s4509_s7 = inlined_call_operand.hbm [shape: bf16[384,128], index: 7, kind: input, shape index: {}]   ;;  %s4510_s8 = inlined_call_operand.vmem [shape: f32[1,128], index: 8, kind: input, shape index: {}]   ;;  %s4511_s9 = inlined_call_operand.vmem [shape: bf16[128,128], index: 9, kind: input, shape index: {}]   ;;  %s4512_s10 = inlined_call_operand.vmem [shape: f32[1,128], index: 10, kind: input, shape index: {}]   ;;  %s4513_s11 = inlined_call_operand.hbm [shape: bf16[128,128], index: 11, kind: input, shape index: {}]   ;;  %s4514_s12 = inlined_call_operand.vmem [shape: f32[1,128], index: 12, kind: input, shape index: {}]   ;;  %s4515_s13 = inlined_call_operand.hbm [shape: bf16[256,256], index: 13, kind: input, shape index: {}]   ;;  %s4516_s14 = inlined_call_operand.vmem [shape: f32[1,256], index: 14, kind: input, shape index: {}]   ;;  %s4517_s15 = inlined_call_operand.hbm [shape: f32[4,256], index: 15, kind: output, shape index: {}]  }
   0x1   :  { %21 = vsyncpa [#allocation6], 0 }
   0x2   :  { %22 = vsyncpa [#allocation9], 0 }
   0x3   :  { %23 = vsyncpa [#allocation4], 0  ;;  %s49_s20 = sshll.u32 %s4507_s5, 4  ;;  %s3689_s21 = smov [#allocation5]   ;;  %s50_s20 = int_to_ptr.hbm [resolvable:$true] %s49_s20 }
   0x4   :  { %s51_s22 = sshll.u32 %s3689_s21, 4  ;;  %s83_s25 = sshll.u32 %s4513_s11, 4  ;;  %s52_s22 = int_to_ptr.vmem [resolvable:$true] %s51_s22  ;;  %s84_s25 = int_to_ptr.hbm [resolvable:$true] %s83_s25 }
   0x5   :  { %s3690_s26 = smov 64   ;;  %s3691_s27 = smov 4  }
   0x6   :  { %57 = dma.hbm_to_vmem [thread:$0]  %s50_s20, 3072, %s52_s22, [#allocation6], %s3690_s26, %s3690_s26, %s3691_s27  }
   0x7   :  { %s3692_s28 = smov [#allocation8]   ;;  %s34_s17 = sshll.u32 %s4505_s3, 4  ;;  %s35_s17 = int_to_ptr.hbm [resolvable:$true] %s34_s17 }
   0x8   :  { %s85_s29 = sshll.u32 %s3692_s28, 4  ;;  %s64_s19 = sshll.u32 %s4509_s7, 4  ;;  %s86_s29 = int_to_ptr.vmem [resolvable:$true] %s85_s29  ;;  %s65_s19 = int_to_ptr.hbm [resolvable:$true] %s64_s19 }
   0x9   :  { %91 = dma.hbm_to_vmem [thread:$0]  %s84_s25, 1024, %s86_s29, [#allocation9], %s3690_s26, %s3690_s26, %s3691_s27  }
   0xa   :  { %s3693_s21 = smov [#allocation2]   ;;  %s3694_s11 = smov [#allocation7]  }
   0xb   :  { %s36_s23 = sshll.u32 %s3693_s21, 4  ;;  %s66_s20 = sshll.u32 %s3694_s11, 4  ;;  %s37_s23 = int_to_ptr.vmem [resolvable:$true] %s36_s23  ;;  %s67_s20 = int_to_ptr.vmem [resolvable:$true] %s66_s20 }
   0xc   :  { %42 = dma.hbm_to_vmem [thread:$0]  %s35_s17, 5120, %s37_s23, [#allocation3], %s3690_s26, %s3690_s26, %s3691_s27  }
   0xd   :  { %s98_s28 = sshll.u32 %s4515_s13, 4  ;;  %s3695_s3 = smov [#allocation10]   ;;  %s99_s28 = int_to_ptr.hbm [resolvable:$true] %s98_s28 }
   0xe   :  { %72 = dma.hbm_to_vmem [thread:$0]  %s65_s19, 3072, %s67_s20, [#allocation6], %s3690_s26, %s3690_s26, %s3691_s27  }
   0xf   :  { %s100_s25 = sshll.u32 %s3695_s3, 4  ;;  %s3696_s29 = smov 128   ;;  %s101_s25 = int_to_ptr.vmem [resolvable:$true] %s100_s25 }
  0x10   :  { %s3697_s30 = smov 8  }
  0x11   :  { %106 = dma.hbm_to_vmem [thread:$0]  %s99_s28, 4096, %s101_s25, [#allocation9], %s3696_s29, %s3696_s29, %s3697_s30  }
  0x12   :  { %3681 = dma.done.wait [#allocation3], 5120  }
  0x13   :  { %3682 = vsyncadd [#allocation3], 4294962176 }
  0x14   :  { %3683 = dma.done.wait [#allocation6], 6144  }
  0x15   :  { %3684 = vsyncadd [#allocation6], 4294961152 }
  0x16   :  { %3685 = dma.done.wait [#allocation9], 5120  }
  0x17   :  { %3686 = vsyncadd [#allocation9], 4294962176  ;;  %v3335_v0 = vld [vmem:[%s4503_s1 + $0x38] sm:$0xff]  ;;  %v3334_v1 = vld [vmem:[%s4503_s1 + $0x30] sm:$0xff]  ;;  %v266_v32 = vlaneseq  ;;  %vm3698_vm3 = vmmov 1   ;;  %s3699_s17 = smov [#allocation11]  }
  0x18   :  { %229 = vmatpush.bf16.msra.mxu0 %v3335_v0  ;;  %v3333_v2 = vld [vmem:[%s4503_s1 + $0x28] sm:$0xff]  ;;  %v3332_v3 = vld [vmem:[%s4503_s1 + $0x20] sm:$0xff]  ;;  %v3331_v4 = vld [vmem:[%s4503_s1 + $0x18] sm:$0xff]  ;;  %s2624_s27 = sshll.u32 %s4517_s15, 4  ;;  %s2625_s27 = int_to_ptr.hbm [resolvable:$true] %s2624_s27 }
  0x19   :  { %v3330_v5 = vld [vmem:[%s4503_s1 + $0x10] sm:$0xff]  ;;  %v3329_v6 = vld [vmem:[%s4503_s1 + $0x8] sm:$0xff]  ;;  %v3328_v7 = vld [vmem:[%s4503_s1] sm:$0xff]  ;;  %v3837_v36 = vshrl.u32 %v266_v32, 7 }
  0x1a   :  { %v3324_v8 = vld [vmem:[%s4502_s0] sm:$0xff]  ;;  %v3325_v9 = vld [vmem:[%s4502_s0 + $0x8] sm:$0xff]  ;;  %v3359_v10 = vld [vmem:[#allocation2 + $0xb8] sm:$0xff] }
  0x1b   :  { %v3367_v11 = vld [vmem:[#allocation2 + $0xf8] sm:$0xff]  ;;  %1033 = vmatpush.bf16.msra.mxu3 %v3359_v10  ;;  %v3358_v12 = vld [vmem:[#allocation2 + $0xb0] sm:$0xff]  ;;  %v3357_v14 = vld [vmem:[#allocation2 + $0xa8] sm:$0xff]  ;;  %v268_v38 = vadd.s32 8, %v3837_v36  ;;  %vm663_vm0 = vcmp.lt.s32.totalorder %v3837_v36, 6  ;;  %vm606_vm1 = vcmp.lt.s32.totalorder %v3837_v36, 7 }
  0x1c   :  { %230 = vmatpush.bf16.msra.mxu0 %v3334_v1  ;;  %v3366_v13 = vld [vmem:[#allocation2 + $0xf0] sm:$0xff]  ;;  %v3356_v15 = vld [vmem:[#allocation2 + $0xa0] sm:$0xff]  ;;  %v3327_v17 = vld [vmem:[%s4502_s0 + $0x18] sm:$0xff]  ;;  %vm460_vm9 = vcmp.lt.s32.totalorder %v3837_v36, 2  ;;  %vm517_vm11 = vcmp.lt.s32.totalorder %v3837_v36, 1 }
  0x1d   :  { %v3326_v16 = vld [vmem:[%s4502_s0 + $0x10] sm:$0xff]  ;;  %v3355_v18 = vld [vmem:[#allocation2 + $0x98] sm:$0xff]  ;;  %v3365_v19 = vld [vmem:[#allocation2 + $0xe8] sm:$0xff]  ;;  %v3845_v45 = vand.u32 15, %v268_v38 }
  0x1e   :  { %v3354_v20 = vld [vmem:[#allocation2 + $0x90] sm:$0xff]  ;;  %v3364_v21 = vld [vmem:[#allocation2 + $0xe0] sm:$0xff]  ;;  %v3353_v22 = vld [vmem:[#allocation2 + $0x88] sm:$0xff] }
  0x1f   :  { %1034 = vmatpush.bf16.msra.mxu3 %v3358_v12  ;;  %v3363_v23 = vld [vmem:[#allocation2 + $0xd8] sm:$0xff]  ;;  %v3352_v24 = vld [vmem:[#allocation2 + $0x80] sm:$0xff]  ;;  %v3362_v25 = vld [vmem:[#allocation2 + $0xd0] sm:$0xff]  ;;  %v616_v51 = vadd.s32 1, %v3845_v45 }
  0x20   :  { %231 = vmatpush.bf16.msra.mxu0 %v3333_v2  ;;  %v3361_v26 = vld [vmem:[#allocation2 + $0xc8] sm:$0xff]  ;;  %v3360_v27 = vld [vmem:[#allocation2 + $0xc0] sm:$0xff]  ;;  %v3343_v29 = vld [vmem:[#allocation2 + $0x38] sm:$0xff] }
  0x21   :  { %v3351_v30 = vld [vmem:[#allocation2 + $0x78] sm:$0xff]  ;;  %v3834_v31 = vld [vmem:[%s4504_s2] ss:$0 sm:$0xff]  ;;  %975 = vmatpush.bf16.msra.mxu1 %v3343_v29  ;;  %v3342_v33 = vld [vmem:[#allocation2 + $0x30] sm:$0xff]  ;;  %vm632_vm2 = vcmp.lt.s32.totalorder %v616_v51, 16  ;;  %v272_v29 = vadd.s32 40, %v3837_v36 }
  0x22   :  { %1004 = vmatpush.bf16.msra.mxu2 %v3351_v30  ;;  %v3350_v34 = vld [vmem:[#allocation2 + $0x70] sm:$0xff]  ;;  %v3341_v40 = vld [vmem:[#allocation2 + $0x28] sm:$0xff]  ;;  %v3340_v44 = vld [vmem:[#allocation2 + $0x20] sm:$0xff]  ;;  %s2622_s2 = sshll.u32 %s3699_s17, 4  ;;  %s2623_s2 = int_to_ptr.vmem [resolvable:$true] %s2622_s2 }
  0x23   :  { %1035 = vmatpush.bf16.msra.mxu3 %v3357_v14  ;;  %v3349_v41 = vld [vmem:[#allocation2 + $0x68] sm:$0xff]  ;;  %v3348_v46 = vld [vmem:[#allocation2 + $0x60] sm:$0xff]  ;;  %v3339_v54 = vld [vmem:[#allocation2 + $0x18] sm:$0xff] }
  0x24   :  { %232 = vmatpush.bf16.msra.mxu0 %v3332_v3  ;;  %v3347_v55 = vld [vmem:[#allocation2 + $0x58] sm:$0xff]  ;;  %v3338_v58 = vld [vmem:[#allocation2 + $0x10] sm:$0xff]  ;;  %vm2868_vm4 = vmpackc.low %vm632_vm2, %vm3698_vm3 }
  0x25   :  { %976 = vmatpush.bf16.msra.mxu1 %v3342_v33  ;;  %v3346_v59 = vld [vmem:[#allocation2 + $0x50] sm:$0xff]  ;;  %v3336_v10 = vld [vmem:[#allocation2] sm:$0xff] }
  0x26   :  { %1005 = vmatpush.bf16.msra.mxu2 %v3350_v34  ;;  %v3344_v12 = vld [vmem:[#allocation2 + $0x40] sm:$0xff]  ;;  %v3374_v33 = vld [vmem:[#allocation2 + $0x130] sm:$0xff] }
  0x27   :  { %1036 = vmatpush.bf16.msra.mxu3 %v3356_v15  ;;  %v3372_v51 = vld [vmem:[#allocation2 + $0x120] sm:$0xff] }
  0x28   :  { %233 = vmatpush.bf16.msra.mxu0 %v3331_v4  ;;  %v270_v4 = vadd.s32 24, %v3837_v36 }
  0x29   :  { %977 = vmatpush.bf16.msra.mxu1 %v3341_v40 }
  0x2a   :  { %1006 = vmatpush.bf16.msra.mxu2 %v3349_v41 }
  0x2b   :  { %1037 = vmatpush.bf16.msra.mxu3 %v3355_v18 }
  0x2c   :  { %234 = vmatpush.bf16.msra.mxu0 %v3330_v5 }
  0x2d   :  { %978 = vmatpush.bf16.msra.mxu1 %v3340_v44 }
  0x2e   :  { %1007 = vmatpush.bf16.msra.mxu2 %v3348_v46  ;;  %v3373_v46 = vld [vmem:[#allocation2 + $0x128] sm:$0xff] }
  0x2f   :  { %1038 = vmatpush.bf16.msra.mxu3 %v3354_v20 }
  0x30   :  { %235 = vmatpush.bf16.msra.mxu0 %v3329_v6 }
  0x31   :  { %979 = vmatpush.bf16.msra.mxu1 %v3339_v54 }
  0x32   :  { %1008 = vmatpush.bf16.msra.mxu2 %v3347_v55 }
  0x33   :  { %1039 = vmatpush.bf16.msra.mxu3 %v3353_v22 }
  0x34   :  { %236 = vmatpush.bf16.msra.mxu0 %v3328_v7  ;;  %v3337_v7 = vld [vmem:[#allocation2 + $0x8] sm:$0xff] }
  0x35   :  { %980 = vmatpush.bf16.msra.mxu1 %v3338_v58 }
  0x36   :  { %1009 = vmatpush.bf16.msra.mxu2 %v3346_v59 }
  0x37   :  { %237 = vmatmul.bf16.vlgmr.msra.gmra.mxu0 %v3324_v8  ;;  %1040 = vmatpush.bf16.msra.mxu3 %v3352_v24  ;;  %v3345_v8 = vld [vmem:[#allocation2 + $0x48] sm:$0xff] }
  0x38   :  { %1062 = vmatpush.bf16.msrb.mxu0 %v3367_v11  ;;  %v3884_v11 = vand.u32 15, %v270_v4 }
  0x39   :  { %981 = vmatpush.bf16.msra.mxu1 %v3337_v7 }
  0x3a   :  { %1010 = vmatpush.bf16.msra.mxu2 %v3345_v8 }
  0x3c   :  { %1063 = vmatpush.bf16.msrb.mxu0 %v3366_v13 }
  0x3d   :  { %982 = vmatpush.bf16.msra.mxu1 %v3336_v10 }
  0x3e   :  { %1011 = vmatpush.bf16.msra.mxu2 %v3344_v12 }
  0x40   :  { %1064 = vmatpush.bf16.msrb.mxu0 %v3365_v19  ;;  %v3375_v19 = vld [vmem:[#allocation2 + $0x138] sm:$0xff] }
  0x41   :  { %1091 = vmatpush.bf16.msrb.mxu1 %v3375_v19 }
  0x44   :  { %1065 = vmatpush.bf16.msrb.mxu0 %v3364_v21 }
  0x45   :  { %1092 = vmatpush.bf16.msrb.mxu1 %v3374_v33 }
  0x47   :  { %242 = vmatmul.bf16.gmra.mxu0 %v3325_v9 }
  0x48   :  { %1066 = vmatpush.bf16.msrb.mxu0 %v3363_v23 }
  0x49   :  { %1093 = vmatpush.bf16.msrb.mxu1 %v3373_v46 }
  0x4c   :  { %1067 = vmatpush.bf16.msrb.mxu0 %v3362_v25 }
  0x4d   :  { %1094 = vmatpush.bf16.msrb.mxu1 %v3372_v51 }
  0x50   :  { %1068 = vmatpush.bf16.msrb.mxu0 %v3361_v26 }
  0x54   :  { %1069 = vmatpush.bf16.msrb.mxu0 %v3360_v27 }
  0x57   :  { %247 = vmatmul.bf16.gmra.mxu0 %v3326_v16  ;;  %v618_v16 = vadd.s32 1, %v3884_v11 }
  0x59   :  { %vm634_vm5 = vcmp.lt.s32.totalorder %v618_v16, 16 }
  0x5a   :  { %vm2871_vm6 = vmpackc.low %vm634_vm5, %vm3698_vm3 }
  0x67   :  { %252 = vmatmul.bf16.gmra.mxu0 %v3327_v17 }
  0xb4   :  { %v238_v28 = vpop.f32.mrf.mxu0 }
  0xb5   :  { %v239_v35 = vadd.f32 %v3834_v31, %v238_v28 }
  0xb7   :  { %v3841_v42 = vmax.f32 %v239_v35, 0.0  ;;  %v3915_v35 = vand.u32 15, %v272_v29 }
  0xb9   :  { %v655_v48 = vrot.slane %v3841_v42, 2  ;;  %v598_v60 = vrot.slane %v3841_v42, 1  ;;  %v620_v40 = vadd.s32 1, %v3915_v35  ;;  %v452_v8 = vrot.slane %v3841_v42, 6 }
  0xbb   :  { %vm636_vm7 = vcmp.lt.s32.totalorder %v620_v40, 16 }
  0xbc   :  { %v240_v37 = vpop.f32.mrf.mxu0  ;;  %vm2874_vm8 = vmpackc.low %vm636_vm7, %vm3698_vm3 }
  0xbd   :  { %v241_v39 = vadd.f32 %v3834_v31, %v240_v37 }
  0xbf   :  { %v3843_v43 = vmax.f32 %v241_v39, 0.0 }
  0xc1   :  { %v714_v47 = vpack.c.bf16 %v3843_v43, %v3841_v42  ;;  %v656_v49 = vrot.slane %v3843_v43, 2  ;;  %v599_v57 = vrot.slane %v3843_v43, 1  ;;  %v453_v4 = vrot.slane %v3843_v43, 6 }
  0xc2   :  { %v510_v7 = vrot.slane %v3843_v43, 7 }
  0xc3   :  { %1041 = vmatmul.bf16.vlgmr.msra.gmra.mxu3 %v714_v47  ;;  %v3857_v52 = vsel %vm663_vm0, %v655_v48, %v656_v49  ;;  %v613_v0 = vsel %vm606_vm1, %v598_v60, %v599_v57 }
  0xc4   :  { %v243_v50 = vpop.f32.mrf.mxu0 }
  0xc5   :  { %v244_v53 = vadd.f32 %v3834_v31, %v243_v50  ;;  %v3930_v50 = vand.u32 15, %v3837_v36 }
  0xc7   :  { %v3860_v56 = vmax.f32 %v244_v53, 0.0  ;;  %v469_v58 = vadd.s32 4294967294, %v3930_v50 }
  0xc9   :  { %v600_v61 = vrot.slane %v3860_v56, 1  ;;  %v657_v62 = vrot.slane %v3860_v56, 2  ;;  %vm477_vm10 = vcmp.ge.s32.totalorder %v469_v58, 0 }
  0xca   :  { %vm3966_vm13 = vmpackc.low %vm3698_vm3, %vm477_vm10 }
  0xcb   :  { %v612_v63 = vsel %vm606_vm1, %v599_v57, %v600_v61  ;;  %v3876_v1 = vsel %vm663_vm0, %v656_v49, %v657_v62 }
  0xcc   :  { %v245_v2 = vpop.f32.mrf.mxu0  ;;  %v2869_v3 = vpack.c.bf16 %v612_v63, %v613_v0  ;;  %v2881_v5 = vpack.c.bf16 %v3876_v1, %v3857_v52  ;;  %v526_v63 = vadd.s32 4294967295, %v3930_v50  ;;  %v274_v0 = vadd.s32 56, %v3837_v36 }
  0xcd   :  { %v246_v6 = vadd.f32 %v3834_v31, %v245_v2 }
  0xce   :  { %2870 = vmatmul.msk.bf16.vlgmr.msrb.gmra.mxu0 %vm2868_vm4, %v2869_v3  ;;  %vm534_vm12 = vcmp.ge.s32.totalorder %v526_v63, 0  ;;  %v3956_v10 = vand.u32 15, %v274_v0  ;;  %v3368_v0 = vld [vmem:[#allocation2 + $0x100] sm:$0xff] }
  0xcf   :  { %v3882_v9 = vmax.f32 %v246_v6, 0.0  ;;  %vm2856_vm14 = vmpackc.low %vm3698_vm3, %vm534_vm12 }
  0xd0   :  { %v679_v1 = vadd.s32 2, %v3956_v10 }
  0xd1   :  { %v719_v13 = vpack.c.bf16 %v3882_v9, %v3860_v56  ;;  %v658_v14 = vrot.slane %v3882_v9, 2  ;;  %v601_v21 = vrot.slane %v3882_v9, 1  ;;  %v512_v51 = vrot.slane %v3882_v9, 7 }
  0xd3   :  { %1046 = vmatmul.bf16.gmra.mxu3 %v719_v13  ;;  %v3893_v18 = vsel %vm663_vm0, %v657_v62, %v658_v14  ;;  %v611_v25 = vsel %vm606_vm1, %v600_v61, %v601_v21  ;;  %v509_v13 = vrot.slane %v3841_v42, 7  ;;  %v511_v42 = vrot.slane %v3860_v56, 7 }
  0xd4   :  { %v248_v15 = vpop.f32.mrf.mxu0 }
  0xd5   :  { %v249_v17 = vadd.f32 %v3834_v31, %v248_v15  ;;  %v467_v15 = vsel %vm460_vm9, %v452_v8, %v453_v4  ;;  %v524_v19 = vsel %vm517_vm11, %v509_v13, %v510_v7 }
  0xd7   :  { %v3895_v20 = vmax.f32 %v249_v17, 0.0 }
  0xd9   :  { %v602_v22 = vrot.slane %v3895_v20, 1  ;;  %v659_v23 = vrot.slane %v3895_v20, 2 }
  0xdb   :  { %v610_v24 = vsel %vm606_vm1, %v601_v21, %v602_v22  ;;  %v3907_v26 = vsel %vm663_vm0, %v658_v14, %v659_v23 }
  0xdc   :  { %v250_v27 = vpop.f32.mrf.mxu0  ;;  %v2872_v28 = vpack.c.bf16 %v610_v24, %v611_v25  ;;  %v2884_v30 = vpack.c.bf16 %v3907_v26, %v3893_v18  ;;  %v622_v25 = vadd.s32 1, %v3956_v10 }
  0xdd   :  { %v251_v32 = vadd.f32 %v3834_v31, %v250_v27 }
  0xde   :  { %2873 = vmatmul.msk.bf16.gmra.mxu0 %vm2871_vm6, %v2872_v28  ;;  %vm638_vm15 = vcmp.lt.s32.totalorder %v622_v25, 16 }
  0xdf   :  { %v3913_v34 = vmax.f32 %v251_v32, 0.0  ;;  %v3371_v32 = vld [vmem:[#allocation2 + $0x118] sm:$0xff]  ;;  %vm2877_vm2 = vmpackc.low %vm638_vm15, %vm3698_vm3 }
  0xe0   :  { %1095 = vmatpush.bf16.msrb.mxu1 %v3371_v32 }
  0xe1   :  { %v724_v37 = vpack.c.bf16 %v3913_v34, %v3895_v20  ;;  %v660_v38 = vrot.slane %v3913_v34, 2  ;;  %v603_v49 = vrot.slane %v3913_v34, 1 }
  0xe3   :  { %1051 = vmatmul.bf16.gmra.mxu3 %v724_v37  ;;  %v3924_v44 = vsel %vm663_vm0, %v659_v23, %v660_v38  ;;  %v609_v57 = vsel %vm606_vm1, %v602_v22, %v603_v49  ;;  %v269_v22 = vadd.s32 16, %v3837_v36 }
  0xe4   :  { %v253_v39 = vpop.f32.mrf.mxu0 }
  0xe5   :  { %v254_v41 = vadd.f32 %v3834_v31, %v253_v39  ;;  %v3999_v37 = vand.u32 15, %v269_v22 }
  0xe7   :  { %v3926_v47 = vmax.f32 %v254_v41, 0.0  ;;  %v471_v40 = vadd.s32 4294967294, %v3999_v37  ;;  %v528_v46 = vadd.s32 4294967295, %v3999_v37 }
  0xe9   :  { %v604_v53 = vrot.slane %v3926_v47, 1  ;;  %v661_v54 = vrot.slane %v3926_v47, 2  ;;  %vm479_vm4 = vcmp.ge.s32.totalorder %v471_v40, 0  ;;  %vm536_vm5 = vcmp.ge.s32.totalorder %v528_v46, 0 }
  0xea   :  { %vm2859_vm6 = vmpackc.low %vm3698_vm3, %vm536_vm5  ;;  %v515_v32 = vrot.slane %v3926_v47, 7  ;;  %v675_v46 = vadd.s32 2, %v3884_v11 }
  0xeb   :  { %v608_v55 = vsel %vm606_vm1, %v603_v49, %v604_v53  ;;  %v3942_v59 = vsel %vm663_vm0, %v660_v38, %v661_v54  ;;  %v3370_v38 = vld [vmem:[#allocation2 + $0x110] sm:$0xff]  ;;  %v455_v49 = vrot.slane %v3882_v9, 6 }
  0xec   :  { %v255_v61 = vpop.f32.mrf.mxu0  ;;  %v2875_v62 = vpack.c.bf16 %v608_v55, %v609_v57  ;;  %v2887_v2 = vpack.c.bf16 %v3942_v59, %v3924_v44  ;;  %1096 = vmatpush.bf16.msrb.mxu1 %v3370_v38  ;;  %v523_v57 = vsel %vm517_vm11, %v510_v7, %v511_v42  ;;  %v457_v7 = vrot.slane %v3913_v34, 6  ;;  %v3391_v44 = vld [vmem:[#allocation5 + $0x78] sm:$0xff]  ;;  %v3390_v59 = vld [vmem:[#allocation5 + $0x70] sm:$0xff] }
  0xed   :  { %v256_v3 = vadd.f32 %v3834_v31, %v255_v61  ;;  %1421 = vmatpush.bf16.msrb.mxu3 %v3391_v44 }
  0xee   :  { %2876 = vmatmul.msk.bf16.gmra.mxu0 %vm2874_vm8, %v2875_v62  ;;  %v3369_v62 = vld [vmem:[#allocation2 + $0x108] sm:$0xff] }
  0xef   :  { %v3950_v6 = vmax.f32 %v256_v3, 0.0 }
  0xf0   :  { %1097 = vmatpush.bf16.msrb.mxu1 %v3369_v62  ;;  %v3385_v62 = vld [vmem:[#allocation5 + $0x48] sm:$0xff] }
  0xf1   :  { %v729_v31 = vpack.c.bf16 %v3950_v6, %v3926_v47  ;;  %v459_v12 = vrot.slane %v3950_v6, 6  ;;  %v516_v14 = vrot.slane %v3950_v6, 7  ;;  %v662_v16 = vrot.slane %v3950_v6, 2  ;;  %1422 = vmatpush.bf16.msrb.mxu3 %v3390_v59  ;;  %v3379_v59 = vld [vmem:[#allocation5 + $0x18] sm:$0xff] }
  0xf2   :  { %v605_v27 = vrot.slane %v3950_v6, 1  ;;  %v673_v6 = vadd.s32 2, %v3845_v45 }
  0xf3   :  { %1056 = vmatmul.bf16.gmra.mxu3 %v729_v31  ;;  %v468_v17 = vsel %vm460_vm9, %v459_v12, %v452_v8  ;;  %v525_v21 = vsel %vm517_vm11, %v516_v14, %v509_v13  ;;  %v3987_v28 = vsel %vm663_vm0, %v661_v54, %v662_v16  ;;  %v3993_v29 = vsel %vm663_vm0, %v662_v16, %v655_v48 }
  0xf4   :  { %v2845_v23 = vpack.c.bf16 %v467_v15, %v468_v17  ;;  %v2857_v24 = vpack.c.bf16 %v524_v19, %v525_v21  ;;  %v2890_v33 = vpack.c.bf16 %v3993_v29, %v3987_v28  ;;  %v607_v39 = vsel %vm606_vm1, %v604_v53, %v605_v27  ;;  %1098 = vmatpush.bf16.msrb.mxu1 %v3368_v0  ;;  %v3398_v28 = vld [vmem:[#allocation5 + $0xb0] sm:$0xff]  ;;  %v3395_v0 = vld [vmem:[#allocation5 + $0x98] sm:$0xff]  ;;  %v3412_v17 = vld [vmem:[#allocation7 + $0x60] sm:$0xff] }
  0xf5   :  { %v614_v48 = vsel %vm606_vm1, %v605_v27, %v598_v60  ;;  %v454_v53 = vrot.slane %v3860_v56, 6  ;;  %v522_v54 = vsel %vm517_vm11, %v511_v42, %v512_v51  ;;  %vm4019_vm1 = vmpackc.low %vm3698_vm3, %vm479_vm4  ;;  %v271_v56 = vadd.s32 32, %v3837_v36  ;;  %v3399_v42 = vld [vmem:[#allocation5 + $0xb8] sm:$0xff] }
  0xf6   :  { %2846 = vmatmul.msk.bf16.vlgmr.msra.gmra.mxu1 %vm3966_vm13, %v2845_v23  ;;  %2858 = vmatmul.msk.bf16.vlgmr.msra.gmra.mxu2 %vm2856_vm14, %v2857_v24  ;;  %v2878_v41 = vpack.c.bf16 %v614_v48, %v607_v39  ;;  %v2860_v61 = vpack.c.bf16 %v522_v54, %v523_v57  ;;  %v514_v8 = vrot.slane %v3913_v34, 7  ;;  %v456_v31 = vrot.slane %v3895_v20, 6  ;;  %v3397_v54 = vld [vmem:[#allocation5 + $0xa8] sm:$0xff]  ;;  %v3383_v57 = vld [vmem:[#allocation5 + $0x38] sm:$0xff]  ;;  %v3420_v48 = vld [vmem:[#allocation7 + $0xa0] sm:$0xff] }
  0xf7   :  { %v465_v60 = vsel %vm460_vm9, %v454_v53, %v455_v49  ;;  %v466_v9 = vsel %vm460_vm9, %v453_v4, %v454_v53  ;;  %v4031_v63 = vand.u32 15, %v271_v56  ;;  %v513_v13 = vrot.slane %v3895_v20, 7  ;;  %v3389_v53 = vld [vmem:[#allocation5 + $0x68] sm:$0xff]  ;;  %1450 = vmatpush.bf16.msra.mxu0 %v3399_v42  ;;  %v3396_v56 = vld [vmem:[#allocation5 + $0xa0] sm:$0xff]  ;;  %1392 = vmatpush.bf16.msrb.mxu2 %v3383_v57 }
  0xf8   :  { %v2848_v58 = vpack.c.bf16 %v465_v60, %v466_v9  ;;  %v463_v15 = vsel %vm460_vm9, %v456_v31, %v457_v7  ;;  %v464_v34 = vsel %vm460_vm9, %v455_v49, %v456_v31  ;;  %v273_v20 = vadd.s32 48, %v3837_v36  ;;  %1423 = vmatpush.bf16.msrb.mxu3 %v3389_v53  ;;  %v3388_v60 = vld [vmem:[#allocation5 + $0x60] sm:$0xff]  ;;  %v3386_v9 = vld [vmem:[#allocation5 + $0x50] sm:$0xff] }
  0xf9   :  { %v473_v3 = vadd.s32 4294967294, %v4031_v63  ;;  %v530_v4 = vadd.s32 4294967295, %v4031_v63  ;;  %v520_v16 = vsel %vm517_vm11, %v513_v13, %v514_v8  ;;  %v521_v19 = vsel %vm517_vm11, %v512_v51, %v513_v13  ;;  %v3394_v31 = vld [vmem:[#allocation5 + $0x90] sm:$0xff] }
  0xfa   :  { %v2851_v21 = vpack.c.bf16 %v463_v15, %v464_v34  ;;  %v2863_v22 = vpack.c.bf16 %v520_v16, %v521_v19  ;;  %v4056_v23 = vand.u32 15, %v273_v20  ;;  %v458_v27 = vrot.slane %v3926_v47, 6  ;;  %v3393_v16 = vld [vmem:[#allocation5 + $0x88] sm:$0xff]  ;;  %v4139_v19 = vld [vmem:[%s4506_s4] ss:$0 sm:$0xff] }
  0xfb   :  { %vm481_vm7 = vcmp.ge.s32.totalorder %v473_v3, 0  ;;  %vm538_vm8 = vcmp.ge.s32.totalorder %v530_v4, 0  ;;  %v518_v39 = vsel %vm517_vm11, %v515_v32, %v516_v14  ;;  %v519_v47 = vsel %vm517_vm11, %v514_v8, %v515_v32  ;;  %1451 = vmatpush.bf16.msra.mxu0 %v3398_v28  ;;  %v3384_v4 = vld [vmem:[#allocation5 + $0x40] sm:$0xff]  ;;  %v3382_v8 = vld [vmem:[#allocation5 + $0x30] sm:$0xff] }
  0xfc   :  { %vm4044_vm10 = vmpackc.low %vm3698_vm3, %vm481_vm7  ;;  %v475_v24 = vadd.s32 4294967294, %v4056_v23  ;;  %v532_v25 = vadd.s32 4294967295, %v4056_v23  ;;  %v461_v38 = vsel %vm460_vm9, %v458_v27, %v459_v12  ;;  %v462_v40 = vsel %vm460_vm9, %v457_v7, %v458_v27  ;;  %1424 = vmatpush.bf16.msrb.mxu3 %v3388_v60  ;;  %1393 = vmatpush.bf16.msrb.mxu2 %v3382_v8  ;;  %v3392_v20 = vld [vmem:[#allocation5 + $0x80] sm:$0xff] }
  0xfd   :  { %vm2862_vm12 = vmpackc.low %vm3698_vm3, %vm538_vm8  ;;  %v2866_v12 = vpack.c.bf16 %v518_v39, %v519_v47  ;;  %vm689_vm5 = vcmp.lt.s32.totalorder %v673_v6, 16  ;;  %vm691_vm11 = vcmp.lt.s32.totalorder %v675_v46, 16  ;;  %v677_v51 = vadd.s32 2, %v3915_v35  ;;  %v3380_v39 = vld [vmem:[#allocation5 + $0x20] sm:$0xff] }
  0xfe   :  { %2879 = vmatmul.msk.bf16.gmra.mxu0 %vm2877_vm2, %v2878_v41  ;;  %vm483_vm14 = vcmp.ge.s32.totalorder %v475_v24, 0  ;;  %vm540_vm15 = vcmp.ge.s32.totalorder %v532_v25, 0  ;;  %v2854_v41 = vpack.c.bf16 %v461_v38, %v462_v40  ;;  %vm4095_vm7 = vmpackc.low %vm691_vm11, %vm3698_vm3 }
  0xff   :  { %vm4071_vm2 = vmpackc.low %vm3698_vm3, %vm483_vm14  ;;  %vm693_vm8 = vcmp.lt.s32.totalorder %v677_v51, 16  ;;  %vm695_vm14 = vcmp.lt.s32.totalorder %v679_v1, 16  ;;  %1452 = vmatpush.bf16.msra.mxu0 %v3397_v54 }
 0x100   :  { %vm2865_vm4 = vmpackc.low %vm3698_vm3, %vm540_vm15 }
 0x101   :  { %vm4117_vm15 = vmpackc.low %vm695_vm14, %vm3698_vm3 }
 0x103   :  { %1453 = vmatpush.bf16.msra.mxu0 %v3396_v56 }
 0x106   :  { %2849 = vmatmul.msk.bf16.gmra.mxu1 %vm4019_vm1, %v2848_v58  ;;  %2861 = vmatmul.msk.bf16.gmra.mxu2 %vm2859_vm6, %v2860_v61  ;;  %vm4084_vm6 = vmpackc.low %vm689_vm5, %vm3698_vm3  ;;  %vm1544_vm5 = vcmp.lt.s32.totalorder %v3837_v36, 3 }
 0x107   :  { %1454 = vmatpush.bf16.msra.mxu0 %v3395_v0 }
 0x10b   :  { %1455 = vmatpush.bf16.msra.mxu0 %v3394_v31 }
 0x10f   :  { %1456 = vmatpush.bf16.msra.mxu0 %v3393_v16 }
 0x113   :  { %1457 = vmatpush.bf16.msra.mxu0 %v3392_v20 }
 0x116   :  { %2852 = vmatmul.msk.bf16.gmra.mxu1 %vm4044_vm10, %v2851_v21  ;;  %2864 = vmatmul.msk.bf16.gmra.mxu2 %vm2862_vm12, %v2863_v22  ;;  %vm4106_vm12 = vmpackc.low %vm693_vm8, %vm3698_vm3  ;;  %v3381_v22 = vld [vmem:[#allocation5 + $0x28] sm:$0xff] }
 0x117   :  { %1394 = vmatpush.bf16.msrb.mxu2 %v3381_v22  ;;  %v3377_v22 = vld [vmem:[#allocation5 + $0x8] sm:$0xff] }
 0x11b   :  { %1395 = vmatpush.bf16.msrb.mxu2 %v3380_v39 }
 0x11f   :  { %1396 = vmatpush.bf16.msrb.mxu2 %v3379_v59 }
 0x126   :  { %2855 = vmatmul.msk.bf16.gmra.mxu1 %vm4071_vm2, %v2854_v41  ;;  %2867 = vmatmul.msk.bf16.gmra.mxu2 %vm2865_vm4, %v2866_v12 }
 0x136   :  { %2882 = vmatmul.msk.bf16.vlgmr.msrb.gmra.mxu1 %vm4084_vm6, %v2881_v5 }
 0x146   :  { %2885 = vmatmul.msk.bf16.gmra.mxu1 %vm4095_vm7, %v2884_v30  ;;  %v1042_v3 = vpop.f32.mrf.mxu3 }
 0x14b   :  { %v1071_v7 = vpop.f32.mrf.mxu0 }
 0x14e   :  { %v1044_v34 = vpop.f32.mrf.mxu3 }
 0x153   :  { %v1073_v24 = vpop.f32.mrf.mxu0 }
 0x156   :  { %2888 = vmatmul.msk.bf16.gmra.mxu1 %vm4106_vm12, %v2887_v2  ;;  %v1047_v47 = vpop.f32.mrf.mxu3 }
 0x15b   :  { %v1076_v6 = vpop.f32.mrf.mxu0 }
 0x15e   :  { %v1049_v28 = vpop.f32.mrf.mxu3 }
 0x163   :  { %v1078_v57 = vpop.f32.mrf.mxu0 }
 0x166   :  { %2891 = vmatmul.msk.bf16.gmra.mxu1 %vm4117_vm15, %v2890_v33  ;;  %v3387_v33 = vld [vmem:[#allocation5 + $0x58] sm:$0xff]  ;;  %v1052_v16 = vpop.f32.mrf.mxu3 }
 0x167   :  { %1425 = vmatpush.bf16.msrb.mxu3 %v3387_v33 }
 0x16b   :  { %1426 = vmatpush.bf16.msrb.mxu3 %v3386_v9 }
 0x16f   :  { %1427 = vmatpush.bf16.msrb.mxu3 %v3385_v62 }
 0x173   :  { %v984_v18 = vpop.f32.mrf.mxu1  ;;  %1428 = vmatpush.bf16.msrb.mxu3 %v3384_v4 }
 0x174   :  { %v985_v27 = vadd.f32 %v4139_v19, %v984_v18 }
 0x179   :  { %v1013_v58 = vpop.f32.mrf.mxu2 }
 0x17a   :  { %v1014_v32 = vadd.f32 %v1013_v58, %v985_v27  ;;  %v3378_v58 = vld [vmem:[#allocation5 + $0x10] sm:$0xff] }
 0x17b   :  { %v986_v26 = vpop.f32.mrf.mxu1  ;;  %1397 = vmatpush.bf16.msrb.mxu2 %v3378_v58 }
 0x17c   :  { %v987_v38 = vadd.f32 %v4139_v19, %v986_v26  ;;  %v1043_v12 = vadd.f32 %v1042_v3, %v1014_v32 }
 0x17e   :  { %v1072_v44 = vadd.f32 %v1071_v7, %v1043_v12 }
 0x17f   :  { %1398 = vmatpush.bf16.msrb.mxu2 %v3377_v22 }
 0x181   :  { %v1015_v13 = vpop.f32.mrf.mxu2 }
 0x182   :  { %v1016_v40 = vadd.f32 %v1015_v13, %v987_v38 }
 0x183   :  { %v4126_v30 = vpop.f32.mrf.mxu1 }
 0x184   :  { %v1045_v46 = vadd.f32 %v1044_v34, %v1016_v40  ;;  %v990_v1 = vadd.f32 %v4139_v19, %v4126_v30 }
 0x186   :  { %v1074_v18 = vadd.f32 %v1073_v24, %v1045_v46  ;;  %v1081_v24 = vpop.f32.mrf.mxu0 }
 0x189   :  { %v1018_v25 = vpop.f32.mrf.mxu2 }
 0x18a   :  { %v1019_v53 = vadd.f32 %v1018_v25, %v990_v1  ;;  %v1054_v1 = vpop.f32.mrf.mxu3 }
 0x18b   :  { %v4128_v2 = vpop.f32.mrf.mxu1 }
 0x18c   :  { %v1048_v33 = vadd.f32 %v1047_v47, %v1019_v53  ;;  %v992_v56 = vadd.f32 %v4139_v19, %v4128_v2 }
 0x18e   :  { %v1077_v3 = vadd.f32 %v1076_v6, %v1048_v33 }
 0x191   :  { %v1020_v51 = vpop.f32.mrf.mxu2 }
 0x192   :  { %v1021_v0 = vadd.f32 %v1020_v51, %v992_v56  ;;  %v3376_v51 = vld [vmem:[#allocation5] sm:$0xff] }
 0x193   :  { %v4130_v29 = vpop.f32.mrf.mxu1  ;;  %1399 = vmatpush.bf16.msrb.mxu2 %v3376_v51 }
 0x194   :  { %v1050_v8 = vadd.f32 %v1049_v28, %v1021_v0  ;;  %v995_v2 = vadd.f32 %v4139_v19, %v4130_v29 }
 0x196   :  { %v1079_v38 = vadd.f32 %v1078_v57, %v1050_v8 }
 0x199   :  { %v1023_v62 = vpop.f32.mrf.mxu2 }
 0x19a   :  { %v1024_v25 = vadd.f32 %v1023_v62, %v995_v2  ;;  %v1057_v62 = vpop.f32.mrf.mxu3 }
 0x19b   :  { %v4132_v61 = vpop.f32.mrf.mxu1 }
 0x19c   :  { %v997_v6 = vadd.f32 %v4139_v19, %v4132_v61 }
 0x1a1   :  { %v1025_v39 = vpop.f32.mrf.mxu2 }
 0x1a3   :  { %v4134_v15 = vpop.f32.mrf.mxu1 }
 0x1a4   :  { %v1000_v61 = vadd.f32 %v4139_v19, %v4134_v15 }
 0x1a9   :  { %v1028_v14 = vpop.f32.mrf.mxu2 }
 0x1aa   :  { %v1029_v57 = vadd.f32 %v1028_v14, %v1000_v61 }
 0x1ab   :  { %v4141_v21 = vpop.f32.mrf.mxu1 }
 0x1b1   :  { %v1030_v15 = vpop.f32.mrf.mxu2 }
 0x1b3   :  { %v1100_v41 = vpop.f32.mrf.mxu1 }
 0x1b4   :  { %v1101_v42 = vadd.f32 %v1100_v41, %v1072_v44  ;;  %v1053_v41 = vadd.f32 %v1052_v16, %v1024_v25  ;;  %v1026_v44 = vadd.f32 %v1025_v39, %v997_v6  ;;  %v1002_v16 = vadd.f32 %v4139_v19, %v4141_v21 }
 0x1b6   :  { %v4147_v54 = vmax.f32 %v1101_v42, 0.0  ;;  %v1082_v59 = vadd.f32 %v1081_v24, %v1053_v41  ;;  %v1031_v22 = vadd.f32 %v1030_v15, %v1002_v16  ;;  %v3407_v15 = vld [vmem:[#allocation7 + $0x38] sm:$0xff]  ;;  %v3409_v16 = vld [vmem:[#allocation7 + $0x48] sm:$0xff] }
 0x1b7   :  { %1817 = vmatpush.bf16.msra.mxu1 %v3407_v15  ;;  %v3400_v15 = vld [vmem:[#allocation7] sm:$0xff] }
 0x1b8   :  { %v1209_v34 = vrot.slane %v4147_v54, 2 }
 0x1bb   :  { %v1102_v60 = vpop.f32.mrf.mxu1 }
 0x1bc   :  { %v1103_v26 = vadd.f32 %v1102_v60, %v1074_v18  ;;  %v1083_v18 = vpop.f32.mrf.mxu0  ;;  %v1055_v60 = vadd.f32 %v1054_v1, %v1026_v44  ;;  %v1177_v1 = vrot.slane %v4147_v54, 6 }
 0x1be   :  { %v4149_v9 = vmax.f32 %v1103_v26, 0.0  ;;  %v1084_v56 = vadd.f32 %v1083_v18, %v1055_v60 }
 0x1c0   :  { %v1234_v30 = vpack.c.bf16 %v4149_v9, %v4147_v54  ;;  %v1210_v31 = vrot.slane %v4149_v9, 2 }
 0x1c2   :  { %1429 = vmatmul.bf16.vlgmr.msrb.gmra.mxu3 %v1234_v30  ;;  %v1223_v27 = vsel %vm663_vm0, %v1209_v34, %v1210_v31 }
 0x1c3   :  { %v1105_v4 = vpop.f32.mrf.mxu1 }
 0x1c4   :  { %v1106_v7 = vadd.f32 %v1105_v4, %v1077_v3 }
 0x1c6   :  { %v4156_v13 = vmax.f32 %v1106_v7, 0.0  ;;  %v1058_v7 = vadd.f32 %v1057_v62, %v1029_v57  ;;  %v3414_v62 = vld [vmem:[#allocation7 + $0x70] sm:$0xff] }
 0x1c8   :  { %v1211_v20 = vrot.slane %v4156_v13, 2  ;;  %v1179_v61 = vrot.slane %v4156_v13, 6 }
 0x1ca   :  { %v1222_v32 = vsel %vm663_vm0, %v1210_v31, %v1211_v20  ;;  %v1086_v31 = vpop.f32.mrf.mxu0 }
 0x1cb   :  { %v3001_v40 = vpack.c.bf16 %v1222_v32, %v1223_v27  ;;  %v1107_v29 = vpop.f32.mrf.mxu1  ;;  %v1087_v24 = vadd.f32 %v1086_v31, %v1058_v7  ;;  %v1059_v27 = vpop.f32.mrf.mxu3  ;;  %v3411_v7 = vld [vmem:[#allocation7 + $0x58] sm:$0xff]  ;;  %v3410_v31 = vld [vmem:[#allocation7 + $0x50] sm:$0xff] }
 0x1cc   :  { %v1108_v47 = vadd.f32 %v1107_v29, %v1079_v38  ;;  %v1060_v32 = vadd.f32 %v1059_v27, %v1031_v22  ;;  %v3408_v22 = vld [vmem:[#allocation7 + $0x40] sm:$0xff] }
 0x1cd   :  { %3002 = vmatmul.msk.bf16.vlgmr.msra.gmra.mxu0 %vm4084_vm6, %v3001_v40 }
 0x1ce   :  { %v4170_v12 = vmax.f32 %v1108_v47, 0.0 }
 0x1d0   :  { %v1237_v46 = vpack.c.bf16 %v4170_v12, %v4156_v13  ;;  %v1212_v26 = vrot.slane %v4170_v12, 2 }
 0x1d2   :  { %1434 = vmatmul.bf16.gmra.mxu3 %v1237_v46  ;;  %v1221_v58 = vsel %vm663_vm0, %v1211_v20, %v1212_v26  ;;  %v1088_v49 = vpop.f32.mrf.mxu0  ;;  %v1178_v46 = vrot.slane %v4149_v9, 6 }
 0x1d3   :  { %v1110_v53 = vpop.f32.mrf.mxu1  ;;  %v1089_v29 = vadd.f32 %v1088_v49, %v1060_v32  ;;  %v3417_v32 = vld [vmem:[#allocation7 + $0x88] sm:$0xff]  ;;  %v4232_v49 = vld [vmem:[%s4508_s6] ss:$0 sm:$0xff] }
 0x1d4   :  { %v1111_v42 = vadd.f32 %v1110_v53, %v1082_v59  ;;  %v1191_v53 = vsel %vm460_vm9, %v1177_v1, %v1178_v46 }
 0x1d6   :  { %v1124_v28 = vmax.f32 %v1111_v42, 0.0 }
 0x1d8   :  { %v1213_v33 = vrot.slane %v1124_v28, 2 }
 0x1da   :  { %v1220_v30 = vsel %vm663_vm0, %v1212_v26, %v1213_v33  ;;  %v1180_v26 = vrot.slane %v4170_v12, 6 }
 0x1db   :  { %v1112_v0 = vpop.f32.mrf.mxu1  ;;  %v3004_v3 = vpack.c.bf16 %v1220_v30, %v1221_v58 }
 0x1dc   :  { %v1113_v4 = vadd.f32 %v1112_v0, %v1084_v56  ;;  %v1189_v43 = vsel %vm460_vm9, %v1179_v61, %v1180_v26  ;;  %v3413_v0 = vld [vmem:[#allocation7 + $0x68] sm:$0xff] }
 0x1dd   :  { %3005 = vmatmul.msk.bf16.gmra.mxu0 %vm4095_vm7, %v3004_v3  ;;  %v3423_v3 = vld [vmem:[#allocation7 + $0xb8] sm:$0xff] }
 0x1de   :  { %v1125_v8 = vmax.f32 %v1113_v4, 0.0  ;;  %1875 = vmatpush.bf16.msra.mxu3 %v3423_v3  ;;  %v3422_v4 = vld [vmem:[#allocation7 + $0xb0] sm:$0xff] }
 0x1e0   :  { %v1240_v2 = vpack.c.bf16 %v1125_v8, %v1124_v28  ;;  %v1214_v38 = vrot.slane %v1125_v8, 2  ;;  %v1182_v54 = vrot.slane %v1125_v8, 6  ;;  %v3421_v8 = vld [vmem:[#allocation7 + $0xa8] sm:$0xff] }
 0x1e2   :  { %1439 = vmatmul.bf16.gmra.mxu3 %v1240_v2  ;;  %v1219_v41 = vsel %vm663_vm0, %v1213_v33, %v1214_v38  ;;  %v1190_v33 = vsel %vm460_vm9, %v1178_v46, %v1179_v61  ;;  %v3419_v2 = vld [vmem:[#allocation7 + $0x98] sm:$0xff] }
 0x1e3   :  { %v1115_v25 = vpop.f32.mrf.mxu1  ;;  %v2992_v57 = vpack.c.bf16 %v1189_v43, %v1190_v33  ;;  %1876 = vmatpush.bf16.msra.mxu3 %v3422_v4 }
 0x1e4   :  { %v1116_v20 = vadd.f32 %v1115_v25, %v1087_v24  ;;  %v3406_v24 = vld [vmem:[#allocation7 + $0x30] sm:$0xff] }
 0x1e5   :  { %1818 = vmatpush.bf16.msra.mxu1 %v3406_v24  ;;  %v3418_v25 = vld [vmem:[#allocation7 + $0x90] sm:$0xff] }
 0x1e6   :  { %v1126_v39 = vmax.f32 %v1116_v20, 0.0 }
 0x1e7   :  { %1877 = vmatpush.bf16.msra.mxu3 %v3421_v8 }
 0x1e8   :  { %v1215_v40 = vrot.slane %v1126_v39, 2  ;;  %v1183_v13 = vrot.slane %v1126_v39, 6 }
 0x1ea   :  { %v1218_v47 = vsel %vm663_vm0, %v1214_v38, %v1215_v40  ;;  %v1186_v55 = vsel %vm460_vm9, %v1182_v54, %v1183_v13  ;;  %v3405_v38 = vld [vmem:[#allocation7 + $0x28] sm:$0xff] }
 0x1eb   :  { %v1117_v19 = vpop.f32.mrf.mxu1  ;;  %v3007_v21 = vpack.c.bf16 %v1218_v47, %v1219_v41  ;;  %1878 = vmatpush.bf16.msra.mxu3 %v3420_v48  ;;  %1819 = vmatpush.bf16.msra.mxu1 %v3405_v38 }
 0x1ec   :  { %v1118_v6 = vadd.f32 %v1117_v19, %v1089_v29  ;;  %v3404_v29 = vld [vmem:[#allocation7 + $0x20] sm:$0xff] }
 0x1ed   :  { %3008 = vmatmul.msk.bf16.gmra.mxu0 %vm4106_vm12, %v3007_v21 }
 0x1ee   :  { %v1127_v51 = vmax.f32 %v1118_v6, 0.0  ;;  %v3403_v6 = vld [vmem:[#allocation7 + $0x18] sm:$0xff] }
 0x1ef   :  { %1879 = vmatpush.bf16.msra.mxu3 %v3419_v2  ;;  %1820 = vmatpush.bf16.msra.mxu1 %v3404_v29 }
 0x1f0   :  { %v1184_v44 = vrot.slane %v1127_v51, 6  ;;  %v1243_v59 = vpack.c.bf16 %v1127_v51, %v1126_v39  ;;  %v1216_v14 = vrot.slane %v1127_v51, 2  ;;  %v3416_v39 = vld [vmem:[#allocation7 + $0x80] sm:$0xff] }
 0x1f2   :  { %1444 = vmatmul.bf16.gmra.mxu3 %v1243_v59  ;;  %v1192_v42 = vsel %vm460_vm9, %v1184_v44, %v1177_v1  ;;  %v1217_v52 = vsel %vm663_vm0, %v1215_v40, %v1216_v14  ;;  %v1224_v9 = vsel %vm663_vm0, %v1216_v14, %v1209_v34  ;;  %v1181_v34 = vrot.slane %v1124_v28, 6  ;;  %v3415_v28 = vld [vmem:[#allocation7 + $0x78] sm:$0xff] }
 0x1f3   :  { %v2989_v18 = vpack.c.bf16 %v1191_v53, %v1192_v42  ;;  %v3010_v60 = vpack.c.bf16 %v1224_v9, %v1217_v52  ;;  %v1185_v30 = vsel %vm460_vm9, %v1183_v13, %v1184_v44  ;;  %1846 = vmatpush.bf16.msra.mxu2 %v3415_v28  ;;  %1880 = vmatpush.bf16.msra.mxu3 %v3418_v25  ;;  %v3402_v52 = vld [vmem:[#allocation7 + $0x10] sm:$0xff]  ;;  %vm1609_vm0 = vcmp.lt.s32.totalorder %v3837_v36, 5  ;;  %v3428_v36 = vld [vmem:[%s4511_s9 + $0x20] sm:$0xff] }
 0x1f4   :  { %v1187_v12 = vsel %vm460_vm9, %v1181_v34, %v1182_v54  ;;  %v1188_v5 = vsel %vm460_vm9, %v1180_v26, %v1181_v34  ;;  %v2998_v58 = vpack.c.bf16 %v1185_v30, %v1186_v55  ;;  %1821 = vmatpush.bf16.msra.mxu1 %v3403_v6 }
 0x1f5   :  { %2990 = vmatmul.msk.bf16.vlgmr.msrb.gmra.mxu2 %vm3966_vm13, %v2989_v18  ;;  %v2995_v56 = vpack.c.bf16 %v1187_v12, %v1188_v5  ;;  %v3401_v5 = vld [vmem:[#allocation7 + $0x8] sm:$0xff] }
 0x1f7   :  { %1847 = vmatpush.bf16.msra.mxu2 %v3414_v62  ;;  %1881 = vmatpush.bf16.msra.mxu3 %v3417_v32 }
 0x1f8   :  { %1822 = vmatpush.bf16.msra.mxu1 %v3402_v52 }
 0x1fb   :  { %1848 = vmatpush.bf16.msra.mxu2 %v3413_v0  ;;  %1882 = vmatpush.bf16.msra.mxu3 %v3416_v39 }
 0x1fc   :  { %1823 = vmatpush.bf16.msra.mxu1 %v3401_v5 }
 0x1fd   :  { %3011 = vmatmul.msk.bf16.gmra.mxu0 %vm4117_vm15, %v3010_v60 }
 0x1ff   :  { %1849 = vmatpush.bf16.msra.mxu2 %v3412_v17 }
 0x200   :  { %1824 = vmatpush.bf16.msra.mxu1 %v3400_v15 }
 0x203   :  { %1850 = vmatpush.bf16.msra.mxu2 %v3411_v7 }
 0x205   :  { %2993 = vmatmul.msk.bf16.gmra.mxu2 %vm4019_vm1, %v2992_v57  ;;  %v1619_v57 = vadd.s32 3, %v3845_v45 }
 0x207   :  { %1851 = vmatpush.bf16.msra.mxu2 %v3410_v31  ;;  %vm1635_vm9 = vcmp.lt.s32.totalorder %v1619_v57, 16 }
 0x208   :  { %vm3120_vm13 = vmpackc.low %vm1635_vm9, %vm3698_vm3 }
 0x20b   :  { %1852 = vmatpush.bf16.msra.mxu2 %v3409_v16  ;;  %v1621_v16 = vadd.s32 3, %v3884_v11 }
 0x20d   :  { %vm1637_vm1 = vcmp.lt.s32.totalorder %v1621_v16, 16  ;;  %v1559_v16 = vadd.s32 4294967293, %v4056_v23  ;;  %v3430_v23 = vld [vmem:[%s4511_s9 + $0x30] sm:$0xff] }
 0x20f   :  { %1853 = vmatpush.bf16.msra.mxu2 %v3408_v22  ;;  %vm1567_vm9 = vcmp.ge.s32.totalorder %v1559_v16, 0 }
 0x215   :  { %2996 = vmatmul.msk.bf16.gmra.mxu2 %vm4044_vm10, %v2995_v56  ;;  %vm3123_vm10 = vmpackc.low %vm1637_vm1, %vm3698_vm3  ;;  %vm2345_vm1 = vcmask 1042434  }
 0x225   :  { %2999 = vmatmul.msk.bf16.gmra.mxu2 %vm4071_vm2, %v2998_v58 }
 0x245   :  { %v1430_v20 = vpop.f32.mrf.mxu3 }
 0x24a   :  { %v1459_v27 = vpop.f32.mrf.mxu0 }
 0x24d   :  { %v1432_v40 = vpop.f32.mrf.mxu3 }
 0x252   :  { %v1461_v47 = vpop.f32.mrf.mxu0 }
 0x255   :  { %v1435_v46 = vpop.f32.mrf.mxu3 }
 0x25a   :  { %v1464_v44 = vpop.f32.mrf.mxu0 }
 0x25d   :  { %v1437_v61 = vpop.f32.mrf.mxu3 }
 0x262   :  { %v1466_v33 = vpop.f32.mrf.mxu0 }
 0x265   :  { %v1440_v62 = vpop.f32.mrf.mxu3 }
 0x26a   :  { %v1469_v17 = vpop.f32.mrf.mxu0 }
 0x26d   :  { %v1442_v22 = vpop.f32.mrf.mxu3 }
 0x278   :  { %v1401_v41 = vpop.f32.mrf.mxu2 }
 0x279   :  { %v1402_v19 = vadd.f32 %v4232_v49, %v1401_v41 }
 0x27b   :  { %v1431_v21 = vadd.f32 %v1430_v20, %v1402_v19  ;;  %v1471_v20 = vpop.f32.mrf.mxu0  ;;  %v1445_v19 = vpop.f32.mrf.mxu3 }
 0x27d   :  { %v1460_v59 = vadd.f32 %v1459_v27, %v1431_v21 }
 0x27f   :  { %v4236_v18 = vmax.f32 %v1460_v59, 0.0 }
 0x280   :  { %v1403_v51 = vpop.f32.mrf.mxu2 }
 0x281   :  { %v1404_v1 = vadd.f32 %v4232_v49, %v1403_v51  ;;  %v1601_v13 = vrot.slane %v4236_v18, 3 }
 0x283   :  { %v1433_v53 = vadd.f32 %v1432_v40, %v1404_v1  ;;  %v1474_v51 = vpop.f32.mrf.mxu0 }
 0x285   :  { %v1462_v42 = vadd.f32 %v1461_v47, %v1433_v53 }
 0x287   :  { %v4238_v14 = vmax.f32 %v1462_v42, 0.0 }
 0x288   :  { %v1406_v9 = vpop.f32.mrf.mxu2 }
 0x289   :  { %v1407_v60 = vadd.f32 %v4232_v49, %v1406_v9  ;;  %v1659_v26 = vpack.c.bf16 %v4238_v14, %v4236_v18  ;;  %v1602_v34 = vrot.slane %v4238_v14, 3  ;;  %v1537_v5 = vrot.slane %v4238_v14, 5 }
 0x28a   :  { %v1625_v14 = vadd.s32 3, %v3956_v10 }
 0x28b   :  { %v1436_v43 = vadd.f32 %v1435_v46, %v1407_v60  ;;  %1854 = vmatmul.bf16.vlgmr.msra.gmra.mxu2 %v1659_v26  ;;  %v1616_v28 = vsel %vm1609_vm0, %v1601_v13, %v1602_v34  ;;  %v1447_v26 = vpop.f32.mrf.mxu3 }
 0x28c   :  { %vm1641_vm7 = vcmp.lt.s32.totalorder %v1625_v14, 16 }
 0x28d   :  { %v1465_v54 = vadd.f32 %v1464_v44, %v1436_v43  ;;  %v1623_v44 = vadd.s32 3, %v3915_v35  ;;  %v1476_v35 = vpop.f32.mrf.mxu0  ;;  %vm3129_vm8 = vmpackc.low %vm1641_vm7, %vm3698_vm3 }
 0x28f   :  { %v4245_v12 = vmax.f32 %v1465_v54, 0.0  ;;  %vm1639_vm2 = vcmp.lt.s32.totalorder %v1623_v44, 16  ;;  %v1553_v54 = vadd.s32 4294967293, %v3930_v50 }
 0x290   :  { %v1408_v56 = vpop.f32.mrf.mxu2  ;;  %vm3126_vm4 = vmpackc.low %vm1639_vm2, %vm3698_vm3 }
 0x291   :  { %v1603_v30 = vrot.slane %v4245_v12, 3  ;;  %v1409_v55 = vadd.f32 %v4232_v49, %v1408_v56  ;;  %vm1561_vm6 = vcmp.ge.s32.totalorder %v1553_v54, 0  ;;  %v1536_v56 = vrot.slane %v4236_v18, 5 }
 0x292   :  { %vm3108_vm11 = vmpackc.low %vm3698_vm3, %vm1561_vm6  ;;  %v1538_v10 = vrot.slane %v4245_v12, 5 }
 0x293   :  { %v1438_v58 = vadd.f32 %v1437_v61, %v1409_v55  ;;  %v1615_v45 = vsel %vm1609_vm0, %v1602_v34, %v1603_v30 }
 0x294   :  { %v3121_v0 = vpack.c.bf16 %v1615_v45, %v1616_v28  ;;  %v1550_v18 = vsel %vm1544_vm5, %v1537_v5, %v1538_v10 }
 0x295   :  { %v1467_v3 = vadd.f32 %v1466_v33, %v1438_v58  ;;  %v1551_v58 = vsel %vm1544_vm5, %v1536_v56, %v1537_v5 }
 0x296   :  { %3122 = vmatmul.msk.bf16.vlgmr.msra.gmra.mxu3 %vm3120_vm13, %v3121_v0  ;;  %vm3117_vm13 = vmpackc.low %vm3698_vm3, %vm1567_vm9 }
 0x297   :  { %v4258_v4 = vmax.f32 %v1467_v3, 0.0 }
 0x298   :  { %v1411_v7 = vpop.f32.mrf.mxu2 }
 0x299   :  { %v1412_v8 = vadd.f32 %v4232_v49, %v1411_v7  ;;  %v1662_v31 = vpack.c.bf16 %v4258_v4, %v4245_v12  ;;  %v1604_v25 = vrot.slane %v4258_v4, 3  ;;  %v1539_v7 = vrot.slane %v4258_v4, 5 }
 0x29b   :  { %v1441_v48 = vadd.f32 %v1440_v62, %v1412_v8  ;;  %1859 = vmatmul.bf16.gmra.mxu2 %v1662_v31  ;;  %v1614_v11 = vsel %vm1609_vm0, %v1603_v30, %v1604_v25  ;;  %v1549_v8 = vsel %vm1544_vm5, %v1538_v10, %v1539_v7  ;;  %v1557_v31 = vadd.s32 4294967293, %v4031_v63 }
 0x29d   :  { %v1470_v2 = vadd.f32 %v1469_v17, %v1441_v48  ;;  %v1555_v17 = vadd.s32 4294967293, %v3999_v37  ;;  %vm1565_vm15 = vcmp.ge.s32.totalorder %v1557_v31, 0 }
 0x29f   :  { %v4264_v24 = vmax.f32 %v1470_v2, 0.0  ;;  %vm1563_vm12 = vcmp.ge.s32.totalorder %v1555_v17, 0 }
 0x2a0   :  { %v1413_v27 = vpop.f32.mrf.mxu2  ;;  %vm3111_vm14 = vmpackc.low %vm3698_vm3, %vm1563_vm12 }
 0x2a1   :  { %v1414_v32 = vadd.f32 %v4232_v49, %v1413_v27  ;;  %v1605_v38 = vrot.slane %v4264_v24, 3  ;;  %v1540_v4 = vrot.slane %v4264_v24, 5  ;;  %v3427_v27 = vld [vmem:[%s4511_s9 + $0x18] sm:$0xff] }
 0x2a3   :  { %v1443_v39 = vadd.f32 %v1442_v22, %v1414_v32  ;;  %v1613_v40 = vsel %vm1609_vm0, %v1604_v25, %v1605_v38  ;;  %v1548_v15 = vsel %vm1544_vm5, %v1539_v7, %v1540_v4  ;;  %v3431_v25 = vld [vmem:[%s4511_s9 + $0x38] sm:$0xff]  ;;  %v3426_v32 = vld [vmem:[%s4511_s9 + $0x10] sm:$0xff] }
 0x2a4   :  { %v3124_v29 = vpack.c.bf16 %v1613_v40, %v1614_v11  ;;  %1984 = vmatpush.bf16.msrb.mxu0 %v3431_v25 }
 0x2a5   :  { %v1472_v47 = vadd.f32 %v1471_v20, %v1443_v39  ;;  %v3429_v20 = vld [vmem:[%s4511_s9 + $0x28] sm:$0xff]  ;;  %v3424_v39 = vld [vmem:[%s4511_s9] sm:$0xff] }
 0x2a6   :  { %3125 = vmatmul.msk.bf16.gmra.mxu3 %vm3123_vm10, %v3124_v29  ;;  %vm2347_vm10 = vcmask 1043459  }
 0x2a7   :  { %v4274_v41 = vmax.f32 %v1472_v47, 0.0  ;;  %v4353_v47 = vld [vmem:[%s4510_s8] ss:$0 sm:$0xff] }
 0x2a8   :  { %v1416_v21 = vpop.f32.mrf.mxu2  ;;  %1985 = vmatpush.bf16.msrb.mxu0 %v3430_v23 }
 0x2a9   :  { %v1417_v6 = vadd.f32 %v4232_v49, %v1416_v21  ;;  %v1665_v46 = vpack.c.bf16 %v4274_v41, %v4264_v24  ;;  %v1606_v42 = vrot.slane %v4274_v41, 3  ;;  %v1541_v37 = vrot.slane %v4274_v41, 5 }
 0x2ab   :  { %v1446_v1 = vadd.f32 %v1445_v19, %v1417_v6  ;;  %1864 = vmatmul.bf16.gmra.mxu2 %v1665_v46  ;;  %v1612_v33 = vsel %vm1609_vm0, %v1605_v38, %v1606_v42  ;;  %v1547_v12 = vsel %vm1544_vm5, %v1540_v4, %v1541_v37  ;;  %v3425_v38 = vld [vmem:[%s4511_s9 + $0x8] sm:$0xff] }
 0x2ac   :  { %v3115_v48 = vpack.c.bf16 %v1547_v12, %v1548_v15  ;;  %1986 = vmatpush.bf16.msrb.mxu0 %v3429_v20 }
 0x2ad   :  { %v1475_v59 = vadd.f32 %v1474_v51, %v1446_v1 }
 0x2af   :  { %v1485_v53 = vmax.f32 %v1475_v59, 0.0 }
 0x2b0   :  { %v1418_v52 = vpop.f32.mrf.mxu2  ;;  %1987 = vmatpush.bf16.msrb.mxu0 %v3428_v36 }
 0x2b1   :  { %v1419_v9 = vadd.f32 %v4232_v49, %v1418_v52  ;;  %v1607_v60 = vrot.slane %v1485_v53, 3  ;;  %v1542_v2 = vrot.slane %v1485_v53, 5 }
 0x2b3   :  { %v1448_v61 = vadd.f32 %v1447_v26, %v1419_v9  ;;  %v1611_v43 = vsel %vm1609_vm0, %v1606_v42, %v1607_v60  ;;  %v1546_v22 = vsel %vm1544_vm5, %v1541_v37, %v1542_v2  ;;  %v3436_v37 = vld [vmem:[#allocation8 + $0x20] sm:$0xff] }
 0x2b4   :  { %v3127_v57 = vpack.c.bf16 %v1611_v43, %v1612_v33  ;;  %1988 = vmatpush.bf16.msrb.mxu0 %v3427_v27 }
 0x2b5   :  { %v1477_v34 = vadd.f32 %v1476_v35, %v1448_v61 }
 0x2b6   :  { %3128 = vmatmul.msk.bf16.gmra.mxu3 %vm3126_vm4, %v3127_v57 }
 0x2b7   :  { %v1486_v49 = vmax.f32 %v1477_v34, 0.0 }
 0x2b8   :  { %1989 = vmatpush.bf16.msrb.mxu0 %v3426_v32 }
 0x2b9   :  { %v1543_v30 = vrot.slane %v1486_v49, 5  ;;  %v1668_v55 = vpack.c.bf16 %v1486_v49, %v1485_v53  ;;  %v1608_v28 = vrot.slane %v1486_v49, 3 }
 0x2bb   :  { %1869 = vmatmul.bf16.gmra.mxu2 %v1668_v55  ;;  %v1552_v45 = vsel %vm1544_vm5, %v1543_v30, %v1536_v56  ;;  %v1610_v62 = vsel %vm1609_vm0, %v1607_v60, %v1608_v28  ;;  %v1617_v0 = vsel %vm1609_vm0, %v1608_v28, %v1601_v13  ;;  %v3112_v13 = vpack.c.bf16 %v1549_v8, %v1550_v18  ;;  %vm3114_vm0 = vmpackc.low %vm3698_vm3, %vm1565_vm15  ;;  %v3439_v28 = vld [vmem:[#allocation8 + $0x38] sm:$0xff]  ;;  %v3437_v8 = vld [vmem:[#allocation8 + $0x28] sm:$0xff] }
 0x2bc   :  { %v3109_v50 = vpack.c.bf16 %v1551_v58, %v1552_v45  ;;  %v3130_v3 = vpack.c.bf16 %v1617_v0, %v1610_v62  ;;  %v1545_v63 = vsel %vm1544_vm5, %v1542_v2, %v1543_v30  ;;  %1990 = vmatpush.bf16.msrb.mxu0 %v3425_v38  ;;  %2093 = vmatpush.bf16.msrb.mxu1 %v3439_v28  ;;  %v3438_v62 = vld [vmem:[#allocation8 + $0x30] sm:$0xff]  ;;  %v3435_v2 = vld [vmem:[#allocation8 + $0x18] sm:$0xff]  ;;  %vm2343_vm3 = vcmask 1041409  }
 0x2bd   :  { %v3118_v24 = vpack.c.bf16 %v1545_v63, %v1546_v22 }
 0x2be   :  { %3110 = vmatmul.msk.bf16.vlgmr.msra.gmra.mxu1 %vm3108_vm11, %v3109_v50 }
 0x2c0   :  { %1991 = vmatpush.bf16.msrb.mxu0 %v3424_v39  ;;  %2094 = vmatpush.bf16.msrb.mxu1 %v3438_v62 }
 0x2c4   :  { %2095 = vmatpush.bf16.msrb.mxu1 %v3437_v8 }
 0x2c6   :  { %3131 = vmatmul.msk.bf16.gmra.mxu3 %vm3129_vm8, %v3130_v3 }
 0x2c8   :  { %2096 = vmatpush.bf16.msrb.mxu1 %v3436_v37 }
 0x2cc   :  { %2097 = vmatpush.bf16.msrb.mxu1 %v3435_v2  ;;  %v3254_v2 = vld [vmem:[#allocation10 + $0x70] sm:$0xf] }
 0x2ce   :  { %3113 = vmatmul.msk.bf16.gmra.mxu1 %vm3111_vm14, %v3112_v13  ;;  %vm2613_vm14 = vcmask 1043456  }
 0x2de   :  { %3116 = vmatmul.msk.bf16.gmra.mxu1 %vm3114_vm0, %v3115_v48 }
 0x2ee   :  { %3119 = vmatmul.msk.bf16.gmra.mxu1 %vm3117_vm13, %v3118_v24  ;;  %v3434_v24 = vld [vmem:[#allocation8 + $0x10] sm:$0xff] }
 0x2ef   :  { %2098 = vmatpush.bf16.msrb.mxu1 %v3434_v24 }
 0x30e   :  { %v1855_v40 = vpop.f32.mrf.mxu2 }
 0x316   :  { %v1857_v29 = vpop.f32.mrf.mxu2 }
 0x319   :  { %v1884_v11 = vpop.f32.mrf.mxu3 }
 0x31e   :  { %v1860_v46 = vpop.f32.mrf.mxu2 }
 0x321   :  { %v1886_v41 = vpop.f32.mrf.mxu3 }
 0x326   :  { %v1862_v61 = vpop.f32.mrf.mxu2 }
 0x329   :  { %v1889_v44 = vpop.f32.mrf.mxu3 }
 0x32e   :  { %v1865_v49 = vpop.f32.mrf.mxu2 }
 0x331   :  { %v1891_v33 = vpop.f32.mrf.mxu3 }
 0x336   :  { %v1867_v0 = vpop.f32.mrf.mxu2 }
 0x339   :  { %v1894_v30 = vpop.f32.mrf.mxu3 }
 0x33b   :  { %v1826_v19 = vpop.f32.mrf.mxu1 }
 0x33c   :  { %v1827_v21 = vadd.f32 %v4353_v47, %v1826_v19  ;;  %v3432_v19 = vld [vmem:[#allocation8] sm:$0xff] }
 0x33e   :  { %v1856_v6 = vadd.f32 %v1855_v40, %v1827_v21  ;;  %v1870_v15 = vpop.f32.mrf.mxu2 }
 0x340   :  { %v1885_v59 = vadd.f32 %v1884_v11, %v1856_v6 }
 0x341   :  { %v1896_v17 = vpop.f32.mrf.mxu3 }
 0x342   :  { %v4357_v52 = vmax.f32 %v1885_v59, 0.0 }
 0x343   :  { %v1828_v51 = vpop.f32.mrf.mxu1 }
 0x344   :  { %v1829_v1 = vadd.f32 %v4353_v47, %v1828_v51 }
 0x346   :  { %v1858_v53 = vadd.f32 %v1857_v29, %v1829_v1  ;;  %v1872_v36 = vpop.f32.mrf.mxu2 }
 0x348   :  { %v1887_v42 = vadd.f32 %v1886_v41, %v1858_v53  ;;  %v3433_v41 = vld [vmem:[#allocation8 + $0x8] sm:$0xff] }
 0x349   :  { %v1899_v63 = vpop.f32.mrf.mxu3  ;;  %2099 = vmatpush.bf16.msrb.mxu1 %v3433_v41  ;;  %v3453_v41 = vld [vmem:[#allocation10 + $0x64] sm:$0xf0] }
 0x34a   :  { %v4359_v9 = vmax.f32 %v1887_v42, 0.0 }
 0x34b   :  { %v1831_v60 = vpop.f32.mrf.mxu1 }
 0x34c   :  { %v1928_v26 = vpack.c.bf16 %v4359_v9, %v4357_v52  ;;  %v1832_v43 = vadd.f32 %v4353_v47, %v1831_v60 }
 0x34d   :  { %2100 = vmatpush.bf16.msrb.mxu1 %v3432_v19 }
 0x34e   :  { %1992 = vmatmul.bf16.vlgmr.msrb.gmra.mxu0 %v1928_v26  ;;  %v1861_v35 = vadd.f32 %v1860_v46, %v1832_v43 }
 0x350   :  { %v1890_v34 = vadd.f32 %v1889_v44, %v1861_v35 }
 0x351   :  { %v1901_v38 = vpop.f32.mrf.mxu3 }
 0x352   :  { %v4365_v55 = vmax.f32 %v1890_v34, 0.0 }
 0x353   :  { %v1833_v57 = vpop.f32.mrf.mxu1 }
 0x354   :  { %v1834_v54 = vadd.f32 %v4353_v47, %v1833_v57 }
 0x356   :  { %v1863_v5 = vadd.f32 %v1862_v61, %v1834_v54 }
 0x358   :  { %v1892_v56 = vadd.f32 %v1891_v33, %v1863_v5 }
 0x35a   :  { %v4367_v58 = vmax.f32 %v1892_v56, 0.0 }
 0x35b   :  { %v1836_v45 = vpop.f32.mrf.mxu1 }
 0x35c   :  { %v1929_v50 = vpack.c.bf16 %v4367_v58, %v4365_v55  ;;  %v1837_v14 = vadd.f32 %v4353_v47, %v1836_v45 }
 0x35e   :  { %1997 = vmatmul.bf16.gmra.mxu0 %v1929_v50  ;;  %v1866_v3 = vadd.f32 %v1865_v49, %v1837_v14 }
 0x360   :  { %v1895_v18 = vadd.f32 %v1894_v30, %v1866_v3 }
 0x362   :  { %v4373_v4 = vmax.f32 %v1895_v18, 0.0 }
 0x363   :  { %v1838_v7 = vpop.f32.mrf.mxu1 }
 0x364   :  { %v1839_v10 = vadd.f32 %v4353_v47, %v1838_v7 }
 0x366   :  { %v1868_v13 = vadd.f32 %v1867_v0, %v1839_v10 }
 0x368   :  { %v1897_v31 = vadd.f32 %v1896_v17, %v1868_v13 }
 0x36a   :  { %v4375_v12 = vmax.f32 %v1897_v31, 0.0  ;;  %v3488_v31 = vld [vmem:[%s4514_s12] ss:$0 sm:$0xff] }
 0x36b   :  { %v1841_v48 = vpop.f32.mrf.mxu1 }
 0x36c   :  { %v1930_v16 = vpack.c.bf16 %v4375_v12, %v4373_v4  ;;  %v1842_v22 = vadd.f32 %v4353_v47, %v1841_v48 }
 0x36e   :  { %2002 = vmatmul.bf16.gmra.mxu0 %v1930_v16  ;;  %v1871_v25 = vadd.f32 %v1870_v15, %v1842_v22 }
 0x370   :  { %v1900_v27 = vadd.f32 %v1899_v63, %v1871_v25  ;;  %v3455_v63 = vld [vmem:[#allocation10 + $0x74] sm:$0xf0] }
 0x371   :  { %v3255_v25 = vor.u32 %v3455_v63, %v3254_v2  ;;  %v3441_v2 = vld [vmem:[#allocation10 + $0x4] sm:$0xf0] }
 0x372   :  { %v4381_v40 = vmax.f32 %v1900_v27, 0.0 }
 0x373   :  { %v1843_v23 = vpop.f32.mrf.mxu1  ;;  %2558 = vmatpush.bf16.msrb.mxu2 %v3255_v25  ;;  %v3256_v25 = vld [vmem:[#allocation10 + $0x78] sm:$0xf0] }
 0x374   :  { %v1844_v20 = vadd.f32 %v4353_v47, %v1843_v23  ;;  %v3487_v47 = vld [vmem:[%s4512_s10] ss:$0 sm:$0xff] }
 0x376   :  { %v1873_v32 = vadd.f32 %v1872_v36, %v1844_v20 }
 0x378   :  { %v1902_v39 = vadd.f32 %v1901_v38, %v1873_v32 }
 0x37a   :  { %v4383_v11 = vmax.f32 %v1902_v39, 0.0 }
 0x37c   :  { %v1931_v29 = vpack.c.bf16 %v4383_v11, %v4381_v40 }
 0x37e   :  { %2007 = vmatmul.bf16.gmra.mxu0 %v1931_v29  ;;  %v3246_v29 = vld [vmem:[#allocation10 + $0x60] sm:$0xf] }
 0x37f   :  { %v3247_v19 = vor.u32 %v3453_v41, %v3246_v29 }
 0x381   :  { %2559 = vmatpush.bf16.msrb.mxu2 %v3247_v19 }
 0x3cb   :  { %v1993_v21 = vpop.f32.mrf.mxu0 }
 0x3cc   :  { %v1994_v6 = vadd.f32 %v3487_v47, %v1993_v21 }
 0x3ce   :  { %3489 = vtanh.f32 %v1994_v6 }
 0x3d3   :  { %v1995_v46 = vpop.f32.mrf.mxu0 }
 0x3d4   :  { %v1996_v51 = vadd.f32 %v3487_v47, %v1995_v46  ;;  %v3490_v1 = vpop.eup %3489  ;;  %v3238_v46 = vld [vmem:[#allocation10 + $0x50] sm:$0xf] }
 0x3d6   :  { %3491 = vtanh.f32 %v1996_v51  ;;  %v3451_v51 = vld [vmem:[#allocation10 + $0x54] sm:$0xf0] }
 0x3db   :  { %v1998_v44 = vpop.f32.mrf.mxu0 }
 0x3dc   :  { %v3492_v59 = vpop.eup %3491  ;;  %v1999_v42 = vadd.f32 %v3487_v47, %v1998_v44 }
 0x3dd   :  { %v2037_v53 = vpack.c.bf16 %v3492_v59, %v3490_v1  ;;  %v3239_v1 = vor.u32 %v3451_v51, %v3238_v46  ;;  %v3240_v46 = vld [vmem:[#allocation10 + $0x58] sm:$0xf0] }
 0x3de   :  { %3493 = vtanh.f32 %v1999_v42  ;;  %v3449_v42 = vld [vmem:[#allocation10 + $0x44] sm:$0xf0] }
 0x3df   :  { %2101 = vmatmul.bf16.vlgmr.msrb.gmra.mxu1 %v2037_v53  ;;  %2560 = vmatpush.bf16.msrb.mxu2 %v3239_v1  ;;  %v3230_v53 = vld [vmem:[#allocation10 + $0x40] sm:$0xf] }
 0x3e3   :  { %v2000_v60 = vpop.f32.mrf.mxu0 }
 0x3e4   :  { %v2001_v26 = vadd.f32 %v3487_v47, %v2000_v60  ;;  %v3494_v61 = vpop.eup %3493  ;;  %v3231_v60 = vor.u32 %v3449_v42, %v3230_v53 }
 0x3e6   :  { %3495 = vtanh.f32 %v2001_v26  ;;  %2561 = vmatpush.bf16.msrb.mxu2 %v3231_v60 }
 0x3eb   :  { %v2003_v43 = vpop.f32.mrf.mxu0 }
 0x3ec   :  { %v3496_v33 = vpop.eup %3495  ;;  %v2004_v57 = vadd.f32 %v3487_v47, %v2003_v43  ;;  %v3222_v43 = vld [vmem:[#allocation10 + $0x30] sm:$0xf] }
 0x3ed   :  { %v2038_v35 = vpack.c.bf16 %v3496_v33, %v3494_v61  ;;  %v3447_v33 = vld [vmem:[#allocation10 + $0x34] sm:$0xf0] }
 0x3ee   :  { %3497 = vtanh.f32 %v2004_v57 }
 0x3ef   :  { %2106 = vmatmul.bf16.gmra.mxu1 %v2038_v35  ;;  %v3223_v35 = vor.u32 %v3447_v33, %v3222_v43  ;;  %v3448_v33 = vld [vmem:[#allocation10 + $0x44] sm:$0xf] }
 0x3f1   :  { %2562 = vmatpush.bf16.msrb.mxu2 %v3223_v35  ;;  %v3232_v35 = vld [vmem:[#allocation10 + $0x48] sm:$0xf0] }
 0x3f3   :  { %v2005_v54 = vpop.f32.mrf.mxu0 }
 0x3f4   :  { %v2006_v34 = vadd.f32 %v3487_v47, %v2005_v54  ;;  %v3498_v5 = vpop.eup %3497 }
 0x3f6   :  { %3499 = vtanh.f32 %v2006_v34  ;;  %v3214_v34 = vld [vmem:[#allocation10 + $0x20] sm:$0xf] }
 0x3fb   :  { %v2008_v49 = vpop.f32.mrf.mxu0 }
 0x3fc   :  { %v3500_v56 = vpop.eup %3499  ;;  %v2009_v45 = vadd.f32 %v3487_v47, %v2008_v49 }
 0x3fd   :  { %v2039_v30 = vpack.c.bf16 %v3500_v56, %v3498_v5  ;;  %v3445_v5 = vld [vmem:[#allocation10 + $0x24] sm:$0xf0] }
 0x3fe   :  { %3501 = vtanh.f32 %v2009_v45  ;;  %v3215_v49 = vor.u32 %v3445_v5, %v3214_v34 }
 0x3ff   :  { %2111 = vmatmul.bf16.gmra.mxu1 %v2039_v30 }
 0x400   :  { %2563 = vmatpush.bf16.msrb.mxu2 %v3215_v49  ;;  %v3318_v49 = vld [vmem:[#allocation10 + $0xf0] sm:$0xf] }
 0x403   :  { %v2010_v50 = vpop.f32.mrf.mxu0 }
 0x404   :  { %v2011_v14 = vadd.f32 %v3487_v47, %v2010_v50  ;;  %v3502_v28 = vpop.eup %3501 }
 0x406   :  { %3503 = vtanh.f32 %v2011_v14 }
 0x40c   :  { %v3504_v62 = vpop.eup %3503 }
 0x40d   :  { %v2040_v0 = vpack.c.bf16 %v3504_v62, %v3502_v28 }
 0x40f   :  { %2116 = vmatmul.bf16.gmra.mxu1 %v2040_v0 }
 0x45c   :  { %v2102_v3 = vpop.f32.mrf.mxu1 }
 0x45d   :  { %v2103_v22 = vadd.f32 %v3488_v31, %v2102_v3  ;;  %v3206_v3 = vld [vmem:[#allocation10 + $0x10] sm:$0xf] }
 0x464   :  { %v2104_v17 = vpop.f32.mrf.mxu1 }
 0x465   :  { %v2105_v15 = vadd.f32 %v3488_v31, %v2104_v17 }
 0x46c   :  { %v2107_v7 = vpop.f32.mrf.mxu1 }
 0x46d   :  { %v2108_v23 = vadd.f32 %v3488_v31, %v2107_v7  ;;  %v3443_v7 = vld [vmem:[#allocation10 + $0x14] sm:$0xf0] }
 0x474   :  { %v2109_v10 = vpop.f32.mrf.mxu1 }
 0x475   :  { %v2110_v20 = vadd.f32 %v3488_v31, %v2109_v10 }
 0x47c   :  { %v2112_v8 = vpop.f32.mrf.mxu1 }
 0x47d   :  { %v4395_v48 = vadd.f32 %v3488_v31, %v2112_v8 }
 0x47f   :  { %v2122_v32 = vmax.f32 %v2103_v22, %v4395_v48 }
 0x484   :  { %v2114_v18 = vpop.f32.mrf.mxu1 }
 0x485   :  { %v4393_v37 = vadd.f32 %v3488_v31, %v2114_v18 }
 0x487   :  { %v2123_v36 = vmax.f32 %v2105_v15, %v4393_v37 }
 0x489   :  { %v2126_v21 = vmax.f32 %v2122_v32, %v2123_v36  ;;  %v3452_v36 = vld [vmem:[#allocation10 + $0x64] sm:$0xf] }
 0x48c   :  { %v2117_v13 = vpop.f32.mrf.mxu1 }
 0x48d   :  { %v2118_v16 = vadd.f32 %v3488_v31, %v2117_v13  ;;  %v3207_v13 = vor.u32 %v3443_v7, %v3206_v3  ;;  %v3310_v7 = vld [vmem:[#allocation10 + $0xe0] sm:$0xf] }
 0x48f   :  { %v2124_v38 = vmax.f32 %v2108_v23, %v2118_v16  ;;  %2564 = vmatpush.bf16.msrb.mxu2 %v3207_v13 }
 0x494   :  { %v2119_v24 = vpop.f32.mrf.mxu1 }
 0x495   :  { %v2120_v27 = vadd.f32 %v3488_v31, %v2119_v24  ;;  %v3454_v24 = vld [vmem:[#allocation10 + $0x74] sm:$0xf] }
 0x497   :  { %v2125_v39 = vmax.f32 %v2110_v20, %v2120_v27 }
 0x499   :  { %v2127_v47 = vmax.f32 %v2124_v38, %v2125_v39 }
 0x49b   :  { %v2128_v6 = vmax.f32 %v2126_v21, %v2127_v47 }
 0x49d   :  { %v2129_v44 = vrot.slane %v2128_v6, 4 }
 0x49f   :  { %v2130_v59 = vmax.f32 %v2128_v6, %v2129_v44  ;;  %v3450_v6 = vld [vmem:[#allocation10 + $0x54] sm:$0xf] }
 0x4a0   :  { %v3243_v44 = vor.u32 %v3450_v6, %v3240_v46 }
 0x4a1   :  { %v2131_v26 = vrot.slane %v2130_v59, 2 }
 0x4a3   :  { %v2132_v61 = vmax.f32 %v2130_v59, %v2131_v26 }
 0x4a5   :  { %v2133_v57 = vrot.slane %v2132_v61, 1 }
 0x4a7   :  { %v2134_v54 = vmax.f32 %v2132_v61, %v2133_v57 }
 0x4a9   :  { %v2141_v56 = vsub.f32 %v2118_v16, %v2134_v54  ;;  %v2142_v30 = vsub.f32 %v2120_v27, %v2134_v54  ;;  %v2135_v45 = vsub.f32 %v2103_v22, %v2134_v54  ;;  %v2136_v50 = vsub.f32 %v2105_v15, %v2134_v54  ;;  %v3198_v15 = vld [vmem:[#allocation10] sm:$0xf]  ;;  %v3248_v27 = vld [vmem:[#allocation10 + $0x68] sm:$0xf0] }
 0x4aa   :  { %v2137_v14 = vsub.f32 %v2108_v23, %v2134_v54  ;;  %v2138_v28 = vsub.f32 %v2110_v20, %v2134_v54  ;;  %v2139_v17 = vsub.f32 %v4395_v48, %v2134_v54  ;;  %v2140_v10 = vsub.f32 %v4393_v37, %v2134_v54 }
 0x4ab   :  { %v2155_v62 = vmul.f32 1.442695, %v2141_v56  ;;  %v2157_v0 = vmul.f32 1.442695, %v2142_v30  ;;  %v2143_v8 = vmul.f32 1.442695, %v2135_v45  ;;  %v3199_v22 = vor.u32 %v3441_v2, %v3198_v15 }
 0x4ac   :  { %v2145_v18 = vmul.f32 1.442695, %v2136_v50  ;;  %v2147_v31 = vmul.f32 1.442695, %v2137_v14  ;;  %v2149_v16 = vmul.f32 1.442695, %v2138_v28  ;;  %v3259_v23 = vor.u32 %v3454_v24, %v3256_v25 }
 0x4ad   :  { %3505 = vpow2.f32 %v2155_v62  ;;  %v2151_v63 = vmul.f32 1.442695, %v2139_v17  ;;  %v2153_v48 = vmul.f32 1.442695, %v2140_v10  ;;  %2565 = vmatpush.bf16.msrb.mxu2 %v3199_v22  ;;  %v3251_v39 = vor.u32 %v3452_v36, %v3248_v27  ;;  %v3471_v56 = vld [vmem:[#allocation10 + $0xf4] sm:$0xf0] }
 0x4ae   :  { %3507 = vpow2.f32 %v2157_v0  ;;  %v3235_v54 = vor.u32 %v3448_v33, %v3232_v35  ;;  %v3319_v50 = vor.u32 %v3471_v56, %v3318_v49  ;;  %v3469_v10 = vld [vmem:[#allocation10 + $0xe4] sm:$0xf0]  ;;  %v3302_v2 = vld [vmem:[#allocation10 + $0xd0] sm:$0xf]  ;;  %v3446_v25 = vld [vmem:[#allocation10 + $0x34] sm:$0xf] }
 0x4af   :  { %3509 = vpow2.f32 %v2143_v8  ;;  %v3208_v33 = vld [vmem:[#allocation10 + $0x18] sm:$0xf0] }
 0x4b0   :  { %3511 = vpow2.f32 %v2145_v18  ;;  %2571 = vmatpush.bf16.msrb.mxu3 %v3319_v50  ;;  %v3311_v18 = vor.u32 %v3469_v10, %v3310_v7  ;;  %v3463_v10 = vld [vmem:[#allocation10 + $0xb4] sm:$0xf0] }
 0x4b1   :  { %3513 = vpow2.f32 %v2147_v31  ;;  %2584 = vmatpush.bf16.msra.mxu2 %v3259_v23 }
 0x4b2   :  { %3515 = vpow2.f32 %v2149_v16 }
 0x4b3   :  { %v4401_v37 = vpop.eup %3505  ;;  %3517 = vpow2.f32 %v2151_v63  ;;  %v3467_v63 = vld [vmem:[#allocation10 + $0xd4] sm:$0xf0] }
 0x4b4   :  { %v4403_v20 = vpop.eup %3507  ;;  %3519 = vpow2.f32 %v2153_v48  ;;  %2572 = vmatpush.bf16.msrb.mxu3 %v3311_v18  ;;  %v3303_v24 = vor.u32 %v3467_v63, %v3302_v2  ;;  %v3224_v48 = vld [vmem:[#allocation10 + $0x38] sm:$0xf0] }
 0x4b5   :  { %v4405_v32 = vpop.eup %3509  ;;  %v2180_v38 = vadd.f32 %v4403_v20, %v4401_v37  ;;  %2585 = vmatpush.bf16.msra.mxu2 %v3251_v39  ;;  %v3227_v36 = vor.u32 %v3446_v25, %v3224_v48  ;;  %v3461_v25 = vld [vmem:[#allocation10 + $0xa4] sm:$0xf0] }
 0x4b6   :  { %v4409_v29 = vpop.eup %3511 }
 0x4b7   :  { %v4411_v41 = vpop.eup %3513  ;;  %v2181_v19 = vrot.slane %v2180_v38, 4  ;;  %v2159_v21 = vadd.f32 %v4409_v29, %v4405_v32 }
 0x4b8   :  { %v4415_v47 = vpop.eup %3515  ;;  %2573 = vmatpush.bf16.msrb.mxu3 %v3303_v24  ;;  %v3278_v24 = vld [vmem:[#allocation10 + $0xa0] sm:$0xf] }
 0x4b9   :  { %v4417_v51 = vpop.eup %3517  ;;  %v2182_v1 = vadd.f32 %v2181_v19, %v2180_v38  ;;  %v2160_v59 = vrot.slane %v2159_v21, 4  ;;  %v2166_v53 = vadd.f32 %v4415_v47, %v4411_v41  ;;  %2586 = vmatpush.bf16.msra.mxu2 %v3243_v44  ;;  %v3444_v19 = vld [vmem:[#allocation10 + $0x24] sm:$0xf] }
 0x4ba   :  { %v4421_v42 = vpop.eup %3519 }
 0x4bb   :  { %v2183_v60 = vrot.slane %v2182_v1, 2  ;;  %v2161_v26 = vadd.f32 %v2160_v59, %v2159_v21  ;;  %v2167_v61 = vrot.slane %v2166_v53, 4  ;;  %v2173_v43 = vadd.f32 %v4421_v42, %v4417_v51  ;;  %v3216_v21 = vld [vmem:[#allocation10 + $0x28] sm:$0xf0] }
 0x4bc   :  { %v3219_v46 = vor.u32 %v3444_v19, %v3216_v21  ;;  %v3459_v19 = vld [vmem:[#allocation10 + $0x94] sm:$0xf0] }
 0x4bd   :  { %v2184_v57 = vadd.f32 %v2183_v60, %v2182_v1  ;;  %v2162_v34 = vrot.slane %v2161_v26, 2  ;;  %v2168_v5 = vadd.f32 %v2167_v61, %v2166_v53  ;;  %v2174_v30 = vrot.slane %v2173_v43, 4  ;;  %2587 = vmatpush.bf16.msra.mxu2 %v3235_v54 }
 0x4bf   :  { %v2185_v45 = vrot.slane %v2184_v57, 1  ;;  %v2163_v14 = vadd.f32 %v2162_v34, %v2161_v26  ;;  %v2169_v28 = vrot.slane %v2168_v5, 2  ;;  %v2175_v62 = vadd.f32 %v2174_v30, %v2173_v43  ;;  %v3442_v43 = vld [vmem:[#allocation10 + $0x14] sm:$0xf]  ;;  %v3465_v34 = vld [vmem:[#allocation10 + $0xc4] sm:$0xf0] }
 0x4c0   :  { %v3211_v35 = vor.u32 %v3442_v43, %v3208_v33 }
 0x4c1   :  { %v2186_v0 = vadd.f32 %v2185_v45, %v2184_v57  ;;  %v2164_v3 = vrot.slane %v2163_v14, 1  ;;  %v2170_v17 = vadd.f32 %v2169_v28, %v2168_v5  ;;  %v2176_v8 = vrot.slane %v2175_v62, 2  ;;  %2588 = vmatpush.bf16.msra.mxu2 %v3227_v36  ;;  %v3200_v28 = vld [vmem:[#allocation10 + $0x8] sm:$0xf0] }
 0x4c2   :  { %v3279_v36 = vor.u32 %v3461_v25, %v3278_v24 }
 0x4c3   :  { %3521 = vrcp.f32 %v2186_v0  ;;  %v2165_v13 = vadd.f32 %v2164_v3, %v2163_v14  ;;  %v2171_v31 = vrot.slane %v2170_v17, 1  ;;  %v2177_v16 = vadd.f32 %v2176_v8, %v2175_v62  ;;  %v3440_v14 = vld [vmem:[#allocation10 + $0x4] sm:$0xf] }
 0x4c5   :  { %v2172_v15 = vadd.f32 %v2171_v31, %v2170_v17  ;;  %3523 = vrcp.f32 %v2165_v13  ;;  %v2178_v22 = vrot.slane %v2177_v16, 1  ;;  %2589 = vmatpush.bf16.msra.mxu2 %v3219_v46 }
 0x4c7   :  { %3525 = vrcp.f32 %v2172_v15  ;;  %v2179_v23 = vadd.f32 %v2178_v22, %v2177_v16 }
 0x4c9   :  { %v3522_v27 = vpop.eup %3521  ;;  %3527 = vrcp.f32 %v2179_v23  ;;  %2590 = vmatpush.bf16.msra.mxu2 %v3211_v35  ;;  %v3320_v35 = vld [vmem:[#allocation10 + $0xf8] sm:$0xf0] }
 0x4ca   :  { %v4426_v38 = vmul.f32 %v3522_v27, %v4401_v37  ;;  %v4429_v39 = vmul.f32 %v3522_v27, %v4403_v20  ;;  %v3270_v27 = vld [vmem:[#allocation10 + $0x90] sm:$0xf] }
 0x4cb   :  { %v3524_v6 = vpop.eup %3523 }
 0x4cc   :  { %v2205_v1 = vmul.f32 %v4426_v38, %v4381_v40  ;;  %v2206_v44 = vmul.f32 %v4429_v39, %v4383_v11  ;;  %v4436_v59 = vmul.f32 %v3524_v6, %v4405_v32  ;;  %v4439_v37 = vmul.f32 %v3524_v6, %v4409_v29 }
 0x4cd   :  { %v3526_v20 = vpop.eup %3525 }
 0x4ce   :  { %v2228_v53 = vadd.f32 %v2206_v44, %v2205_v1  ;;  %v4442_v60 = vmul.f32 %v3526_v20, %v4411_v41  ;;  %v4445_v26 = vmul.f32 %v3526_v20, %v4415_v47  ;;  %v2199_v61 = vmul.f32 %v4436_v59, %v4357_v52  ;;  %v3294_v47 = vld [vmem:[#allocation10 + $0xc0] sm:$0xf] }
 0x4cf   :  { %v2200_v32 = vmul.f32 %v4439_v37, %v4359_v9  ;;  %v3528_v29 = vpop.eup %3527  ;;  %v3295_v30 = vor.u32 %v3465_v34, %v3294_v47  ;;  %v3271_v44 = vor.u32 %v3459_v19, %v3270_v27  ;;  %v3262_v20 = vld [vmem:[#allocation10 + $0x80] sm:$0xf]  ;;  %v3464_v19 = vld [vmem:[#allocation10 + $0xc4] sm:$0xf] }
 0x4d0   :  { %v2229_v57 = vrot.slane %v2228_v53, 4  ;;  %v2201_v54 = vmul.f32 %v4442_v60, %v4365_v55  ;;  %v2202_v41 = vmul.f32 %v4445_v26, %v4367_v58  ;;  %v4456_v5 = vmul.f32 %v3528_v29, %v4417_v51 }
 0x4d1   :  { %v4459_v49 = vmul.f32 %v3528_v29, %v4421_v42  ;;  %v2207_v56 = vadd.f32 %v2200_v32, %v2199_v61  ;;  %2574 = vmatpush.bf16.msrb.mxu3 %v3295_v30  ;;  %v3203_v51 = vor.u32 %v3440_v14, %v3200_v28  ;;  %v3286_v42 = vld [vmem:[#allocation10 + $0xb0] sm:$0xf]  ;;  %v3470_v32 = vld [vmem:[#allocation10 + $0xf4] sm:$0xf] }
 0x4d2   :  { %v2230_v45 = vadd.f32 %v2229_v57, %v2228_v53  ;;  %v2214_v50 = vadd.f32 %v2202_v41, %v2201_v54  ;;  %v2203_v62 = vmul.f32 %v4456_v5, %v4373_v4  ;;  %v3287_v13 = vor.u32 %v3463_v10, %v3286_v42  ;;  %v3457_v53 = vld [vmem:[#allocation10 + $0x84] sm:$0xf0] }
 0x4d3   :  { %v2204_v0 = vmul.f32 %v4459_v49, %v4375_v12  ;;  %v2208_v3 = vrot.slane %v2207_v56, 4  ;;  %2591 = vmatpush.bf16.msra.mxu2 %v3203_v51  ;;  %v3263_v34 = vor.u32 %v3457_v53, %v3262_v20 }
 0x4d4   :  { %v2231_v17 = vrot.slane %v2230_v45, 2  ;;  %v2215_v7 = vrot.slane %v2214_v50, 4 }
 0x4d5   :  { %v2209_v8 = vadd.f32 %v2208_v3, %v2207_v56  ;;  %v2221_v18 = vadd.f32 %v2204_v0, %v2203_v62  ;;  %2575 = vmatpush.bf16.msrb.mxu3 %v3287_v13 }
 0x4d6   :  { %v2232_v31 = vadd.f32 %v2231_v17, %v2230_v45  ;;  %v2216_v16 = vadd.f32 %v2215_v7, %v2214_v50  ;;  %v3312_v50 = vld [vmem:[#allocation10 + $0xe8] sm:$0xf0] }
 0x4d7   :  { %v2210_v15 = vrot.slane %v2209_v8, 2  ;;  %v2222_v2 = vrot.slane %v2221_v18, 4 }
 0x4d8   :  { %v2233_v63 = vrot.slane %v2232_v31, 1  ;;  %v2217_v22 = vrot.slane %v2216_v16, 2 }
 0x4d9   :  { %v2211_v48 = vadd.f32 %v2210_v15, %v2209_v8  ;;  %v2223_v23 = vadd.f32 %v2222_v2, %v2221_v18  ;;  %2576 = vmatpush.bf16.msrb.mxu3 %v3279_v36 }
 0x4da   :  { %v2234_v21 = vadd.f32 %v2233_v63, %v2232_v31  ;;  %v2218_v6 = vadd.f32 %v2217_v22, %v2216_v16  ;;  %v3466_v63 = vld [vmem:[#allocation10 + $0xd4] sm:$0xf] }
 0x4db   :  { %v2212_v46 = vrot.slane %v2211_v48, 1  ;;  %v2224_v1 = vrot.slane %v2223_v23, 2 }
 0x4dc   :  { %v2241_v61 = vsub.f32 %v4381_v40, %v2234_v21  ;;  %v2242_v43 = vsub.f32 %v4383_v11, %v2234_v21  ;;  %v2219_v33 = vrot.slane %v2218_v6, 1  ;;  %v3323_v40 = vor.u32 %v3470_v32, %v3320_v35  ;;  %v3468_v11 = vld [vmem:[#allocation10 + $0xe4] sm:$0xf] }
 0x4dd   :  { %v2213_v29 = vadd.f32 %v2212_v46, %v2211_v48  ;;  %v2225_v57 = vadd.f32 %v2224_v1, %v2223_v23  ;;  %2577 = vmatpush.bf16.msrb.mxu3 %v3271_v44  ;;  %v3315_v10 = vor.u32 %v3468_v11, %v3312_v50 }
 0x4de   :  { %v2249_v54 = vmul.f32 %v2241_v61, %v2241_v61  ;;  %v2250_v41 = vmul.f32 %v2242_v43, %v2242_v43  ;;  %v2220_v47 = vadd.f32 %v2219_v33, %v2218_v6  ;;  %v3296_v6 = vld [vmem:[#allocation10 + $0xc8] sm:$0xf0] }
 0x4df   :  { %v2226_v56 = vrot.slane %v2225_v57, 1  ;;  %v2235_v30 = vsub.f32 %v4357_v52, %v2213_v29  ;;  %v2236_v45 = vsub.f32 %v4359_v9, %v2213_v29 }
 0x4e0   :  { %v2257_v14 = vmul.f32 %v2249_v54, %v4426_v38  ;;  %v2258_v28 = vmul.f32 %v2250_v41, %v4429_v39  ;;  %v2237_v62 = vsub.f32 %v4365_v55, %v2220_v47  ;;  %v2238_v0 = vsub.f32 %v4367_v58, %v2220_v47 }
 0x4e1   :  { %v2227_v3 = vadd.f32 %v2226_v56, %v2225_v57  ;;  %v2243_v51 = vmul.f32 %v2235_v30, %v2235_v30  ;;  %v2244_v17 = vmul.f32 %v2236_v45, %v2236_v45  ;;  %v2344_v7 = vsel %vm2343_vm3, %v2220_v47, %v2213_v29  ;;  %2578 = vmatpush.bf16.msrb.mxu3 %v3263_v34  ;;  %v3462_v47 = vld [vmem:[#allocation10 + $0xb4] sm:$0xf]  ;;  %v3288_v34 = vld [vmem:[#allocation10 + $0xb8] sm:$0xf0]  ;;  %v3460_v30 = vld [vmem:[#allocation10 + $0xa4] sm:$0xf] }
 0x4e2   :  { %v2280_v52 = vadd.f32 %v2258_v28, %v2257_v14  ;;  %v2245_v42 = vmul.f32 %v2237_v62, %v2237_v62  ;;  %v2246_v9 = vmul.f32 %v2238_v0, %v2238_v0  ;;  %v3280_v45 = vld [vmem:[#allocation10 + $0xa8] sm:$0xf0]  ;;  %v3291_v50 = vor.u32 %v3462_v47, %v3288_v34  ;;  %v3458_v0 = vld [vmem:[#allocation10 + $0x94] sm:$0xf] }
 0x4e3   :  { %v2239_v8 = vsub.f32 %v4373_v4, %v2227_v3  ;;  %v2240_v18 = vsub.f32 %v4375_v12, %v2227_v3  ;;  %v2251_v38 = vmul.f32 %v2243_v51, %v4436_v59  ;;  %v2252_v39 = vmul.f32 %v2244_v17, %v4439_v37  ;;  %v3304_v12 = vld [vmem:[#allocation10 + $0xd8] sm:$0xf0] }
 0x4e4   :  { %v2281_v55 = vrot.slane %v2280_v52, 4  ;;  %v2253_v58 = vmul.f32 %v2245_v42, %v4442_v60  ;;  %v2254_v13 = vmul.f32 %v2246_v9, %v4445_v26  ;;  %v2346_v31 = vsel %vm2345_vm1, %v2227_v3, %v2344_v7  ;;  %v3272_v3 = vld [vmem:[#allocation10 + $0x98] sm:$0xf0]  ;;  %v3456_v42 = vld [vmem:[#allocation10 + $0x84] sm:$0xf] }
 0x4e5   :  { %2597 = vmatpush.bf16.msra.mxu3 %v3323_v40  ;;  %v2247_v16 = vmul.f32 %v2239_v8, %v2239_v8  ;;  %v2248_v15 = vmul.f32 %v2240_v18, %v2240_v18  ;;  %v2259_v2 = vadd.f32 %v2252_v39, %v2251_v38  ;;  %v2348_v4 = vsel %vm2347_vm10, %v2234_v21, %v2346_v31  ;;  %v3264_v9 = vld [vmem:[#allocation10 + $0x88] sm:$0xf0] }
 0x4e6   :  { %v2282_v22 = vadd.f32 %v2281_v55, %v2280_v52  ;;  %v2266_v59 = vadd.f32 %v2254_v13, %v2253_v58  ;;  %v2390_v24 = vpack.c.bf16 %v2348_v4, %v2348_v4  ;;  %v3307_v23 = vor.u32 %v3466_v63, %v3304_v12 }
 0x4e7   :  { %v2255_v37 = vmul.f32 %v2247_v16, %v4456_v5  ;;  %v2256_v25 = vmul.f32 %v2248_v15, %v4459_v49  ;;  %v2260_v60 = vrot.slane %v2259_v2, 4  ;;  %v3299_v5 = vor.u32 %v3464_v19, %v3296_v6 }
 0x4e8   :  { %v2283_v48 = vrot.slane %v2282_v22, 2  ;;  %v2267_v26 = vrot.slane %v2266_v59, 4  ;;  %2566 = vmatmul.bf16.vlgmr.msrb.gmra.mxu2 %v2390_v24  ;;  %v3283_v62 = vor.u32 %v3460_v30, %v3280_v45  ;;  %v3275_v7 = vor.u32 %v3458_v0, %v3272_v3 }
 0x4e9   :  { %2598 = vmatpush.bf16.msra.mxu3 %v3315_v10  ;;  %v2261_v36 = vadd.f32 %v2260_v60, %v2259_v2  ;;  %v2273_v27 = vadd.f32 %v2256_v25, %v2255_v37  ;;  %v3267_v55 = vor.u32 %v3456_v42, %v3264_v9 }
 0x4ea   :  { %v2284_v21 = vadd.f32 %v2283_v48, %v2282_v22  ;;  %v2268_v46 = vadd.f32 %v2267_v26, %v2266_v59 }
 0x4eb   :  { %v2262_v1 = vrot.slane %v2261_v36, 2  ;;  %v2274_v44 = vrot.slane %v2273_v27, 4 }
 0x4ec   :  { %v2285_v20 = vrot.slane %v2284_v21, 1  ;;  %v2269_v53 = vrot.slane %v2268_v46, 2 }
 0x4ed   :  { %2599 = vmatpush.bf16.msra.mxu3 %v3307_v23  ;;  %v2263_v61 = vadd.f32 %v2262_v1, %v2261_v36  ;;  %v2275_v49 = vadd.f32 %v2274_v44, %v2273_v27 }
 0x4ee   :  { %v2286_v43 = vadd.f32 %v2285_v20, %v2284_v21  ;;  %v2270_v33 = vadd.f32 %v2269_v53, %v2268_v46 }
 0x4ef   :  { %v2264_v32 = vrot.slane %v2263_v61, 1  ;;  %v2276_v35 = vrot.slane %v2275_v49, 2 }
 0x4f0   :  { %v4484_v29 = vmax.f32 %v2286_v43, 0.0001  ;;  %v2271_v57 = vrot.slane %v2270_v33, 1 }
 0x4f1   :  { %2600 = vmatpush.bf16.msra.mxu3 %v3299_v5  ;;  %v2265_v54 = vadd.f32 %v2264_v32, %v2263_v61  ;;  %v2277_v41 = vadd.f32 %v2276_v35, %v2275_v49 }
 0x4f2   :  { %v2272_v56 = vadd.f32 %v2271_v57, %v2270_v33  ;;  %3529 = vrsqrt.f32 %v4484_v29  ;;  %vm2334_vm11 = vcmp.eq.f32.partialorder %v4484_v29, inf  ;;  %v2337_v43 = vand.u32 2147483648, %v4484_v29 }
 0x4f3   :  { %v2278_v40 = vrot.slane %v2277_v41, 1  ;;  %v2287_v11 = vmax.f32 %v2265_v54, 0.0001  ;;  %vm2336_vm12 = vcmp.eq.f32.partialorder %v4484_v29, 0.0 }
 0x4f4   :  { %v2288_v14 = vmax.f32 %v2272_v56, 0.0001 }
 0x4f5   :  { %v2279_v28 = vadd.f32 %v2278_v40, %v2277_v41  ;;  %3531 = vrsqrt.f32 %v2287_v11  ;;  %2601 = vmatpush.bf16.msra.mxu3 %v3291_v50  ;;  %vm2298_vm2 = vcmp.eq.f32.partialorder %v2287_v11, inf  ;;  %vm2300_vm4 = vcmp.eq.f32.partialorder %v2287_v11, 0.0  ;;  %v2392_v40 = vld [vmem:[%s4516_s14] sm:$0x3] }
 0x4f6   :  { %3533 = vrsqrt.f32 %v2288_v14  ;;  %v2301_v23 = vand.u32 2147483648, %v2287_v11  ;;  %vm2310_vm5 = vcmp.eq.f32.partialorder %v2288_v14, inf  ;;  %v2313_v6 = vand.u32 2147483648, %v2288_v14 }
 0x4f7   :  { %v2289_v51 = vmax.f32 %v2279_v28, 0.0001  ;;  %vm2312_vm6 = vcmp.eq.f32.partialorder %v2288_v14, 0.0 }
 0x4f8   :  { %v3530_v17 = vpop.eup %3529  ;;  %2592 = vmatmul.bf16.vlgmr.msra.gmra.mxu2 %v2390_v24 }
 0x4f9   :  { %3535 = vrsqrt.f32 %v2289_v51  ;;  %2602 = vmatpush.bf16.msra.mxu3 %v3283_v62  ;;  %v2328_v52 = vmul.f32 %v3530_v17, %v4484_v29  ;;  %vm2322_vm7 = vcmp.eq.f32.partialorder %v2289_v51, inf  ;;  %v2325_v53 = vand.u32 2147483648, %v2289_v51 }
 0x4fa   :  { %vm2324_vm8 = vcmp.eq.f32.partialorder %v2289_v51, 0.0 }
 0x4fb   :  { %v3532_v10 = vpop.eup %3531  ;;  %v2329_v38 = vmul.f32 %v3530_v17, %v2328_v52 }
 0x4fc   :  { %v3534_v8 = vpop.eup %3533  ;;  %v2292_v18 = vmul.f32 %v3532_v10, %v2287_v11 }
 0x4fd   :  { %v2304_v39 = vmul.f32 %v3534_v8, %v2288_v14  ;;  %2603 = vmatpush.bf16.msra.mxu3 %v3275_v7  ;;  %v2330_v13 = vmul.f32 0.5, %v2329_v38 }
 0x4fe   :  { %v2293_v58 = vmul.f32 %v3532_v10, %v2292_v18 }
 0x4ff   :  { %v3536_v31 = vpop.eup %3535  ;;  %v2305_v16 = vmul.f32 %v3534_v8, %v2304_v39  ;;  %v2331_v4 = vsub.f32 1.5, %v2330_v13 }
 0x500   :  { %v2294_v15 = vmul.f32 0.5, %v2293_v58  ;;  %v2316_v2 = vmul.f32 %v3536_v31, %v2289_v51 }
 0x501   :  { %v2306_v63 = vmul.f32 0.5, %v2305_v16  ;;  %2604 = vmatpush.bf16.msra.mxu3 %v3267_v55  ;;  %v2332_v24 = vmul.f32 %v3530_v17, %v2331_v4 }
 0x502   :  { %v2295_v12 = vsub.f32 1.5, %v2294_v15  ;;  %v2317_v22 = vmul.f32 %v3536_v31, %v2316_v2 }
 0x503   :  { %v2307_v59 = vsub.f32 1.5, %v2306_v63  ;;  %v2333_v27 = vmul.f32 %v2332_v24, %v4484_v29 }
 0x504   :  { %v2296_v37 = vmul.f32 %v3532_v10, %v2295_v12  ;;  %v2318_v25 = vmul.f32 0.5, %v2317_v22 }
 0x505   :  { %v2308_v60 = vmul.f32 %v3534_v8, %v2307_v59  ;;  %v2335_v5 = vsel %vm2334_vm11, %v4484_v29, %v2333_v27  ;;  %v2394_v29 = vperm.slane %v2392_v40, 0 }
 0x506   :  { %v2297_v48 = vmul.f32 %v2296_v37, %v2287_v11  ;;  %v2319_v26 = vsub.f32 1.5, %v2318_v25  ;;  %v2338_v32 = vsel %vm2336_vm12, %v2337_v43, %v2335_v5 }
 0x507   :  { %v2309_v36 = vmul.f32 %v2308_v60, %v2288_v14 }
 0x508   :  { %v2299_v19 = vsel %vm2298_vm2, %v2287_v11, %v2297_v48  ;;  %v2320_v21 = vmul.f32 %v3536_v31, %v2319_v26  ;;  %v2395_v11 = vperm.slane %v2392_v40, 1 }
 0x509   :  { %v2302_v46 = vsel %vm2300_vm4, %v2301_v23, %v2299_v19  ;;  %v2311_v1 = vsel %vm2310_vm5, %v2288_v14, %v2309_v36 }
 0x50a   :  { %v2314_v44 = vsel %vm2312_vm6, %v2313_v6, %v2311_v1  ;;  %v2321_v20 = vmul.f32 %v2320_v21, %v2289_v51 }
 0x50b   :  { %v2354_v61 = vsel %vm2343_vm3, %v2314_v44, %v2302_v46 }
 0x50c   :  { %v2323_v49 = vsel %vm2322_vm7, %v2289_v51, %v2321_v20 }
 0x50d   :  { %v2326_v33 = vsel %vm2324_vm8, %v2325_v53, %v2323_v49 }
 0x50e   :  { %v2355_v35 = vsel %vm2345_vm1, %v2326_v33, %v2354_v61 }
 0x50f   :  { %v2356_v57 = vsel %vm2347_vm10, %v2338_v32, %v2355_v35 }
 0x510   :  { %v2391_v54 = vpack.c.bf16 %v2356_v57, %v2356_v57 }
 0x512   :  { %2579 = vmatmul.bf16.vlgmr.msrb.gmra.mxu3 %v2391_v54 }
 0x522   :  { %2605 = vmatmul.bf16.vlgmr.msra.gmra.mxu3 %v2391_v54 }
 0x56b   :  { %v2567_v41 = vpop.f32.mrf.mxu2 }
 0x56c   :  { %v2568_v28 = vadd.f32 %v2567_v41, %v2394_v29 }
 0x573   :  { %v2569_v47 = vpop.f32.mrf.mxu2 }
 0x57b   :  { %v2593_v34 = vpop.f32.mrf.mxu2 }
 0x57c   :  { %v2594_v50 = vadd.f32 %v2593_v34, %v2395_v11 }
 0x583   :  { %v2595_v56 = vpop.f32.mrf.mxu2 }
 0x595   :  { %v2580_v30 = vpop.f32.mrf.mxu3 }
 0x596   :  { %v2581_v0 = vadd.f32 %v2580_v30, %v2568_v28 }
 0x59d   :  { %v2582_v45 = vpop.f32.mrf.mxu3 }
 0x5a5   :  { %v2606_v14 = vpop.f32.mrf.mxu3 }
 0x5a6   :  { %v2607_v62 = vadd.f32 %v2606_v14, %v2594_v50 }
 0x5a8   :  { %v2612_v3 = vrot.slane %v2607_v62, 4 }
 0x5aa   :  { %v2614_v51 = vsel %vm2613_vm14, %v2581_v0, %v2612_v3 }
 0x5ab   :  { %2616 = vst [vmem:[#allocation11] sm:$0xff] %v2614_v51 }
 0x5ac   :  { %2627 = dma.vmem_to_hbm [thread:$0]  %s2623_s2, 128, %s2625_s27, [#allocation4]  }
 0x5ad   :  { %v2608_v17 = vpop.f32.mrf.mxu3 }
 0x5ae   :  { %3687 = dma.done.wait [#allocation4], 128  }
 0x5af   :  { %3688 = vsyncadd [#allocation4], 4294967168 }
 0x5b0   :  { %2632 = vsyncpa [#allocation3], 1 }
 0x5b1   :  { %2633 = vsyncpa [#allocation6], 1 }
 0x5b2   :  { %2634 = vsyncpa [#allocation9], 1 }
 0x5b3   :  { %2635 = vsyncpa [#allocation4], 1 }

</bundles_post_ra>
